<compile_context>
chip_gen: v6e
topology: v6e:2x2x1
jax: 0.10.0
libtpu: 0.0.40
codegen_flags: <defaults>
</compile_context>

<pallas_src>
import functools
import math

import jax
import jax.numpy as jnp
from jax import lax
from jax.experimental import pallas as pl
from jax.experimental.pallas import tpu as pltpu

# ---------------- small config consistent with the module's __init__ ----------------
VOCAB_SIZE   = 100
NUM_LAYERS   = 2          # num_hidden_layers
NUM_CLASSES  = 3
HIDDEN       = 32         # hidden_size
NUM_HEADS    = 4
HEAD_DIM     = HIDDEN // NUM_HEADS
INTERMEDIATE = 4 * HIDDEN # BERT default intermediate_size = 4*hidden
MAX_POS      = 512
TYPE_VOCAB   = 2
LN_EPS       = 1e-12      # BERT layer_norm_eps
PAD_CLASSES  = 128        # lane-dense classifier output; real logits = first NUM_CLASSES cols

BATCH = 2
SEQ   = 8


# --------------------------------- kernel helpers ------------------------------------
def _erf_approx(x):
    # Abramowitz & Stegun 7.1.26 erf polynomial (~1.5e-7 abs err), fp32, built from
    # ops Mosaic supports. Used for BERT's exact ("gelu") activation.
    a1, a2, a3, a4, a5 = 0.254829592, -0.284496736, 1.421413741, -1.453152027, 1.061405429
    ax = jnp.abs(x)
    t = 1.0 / (1.0 + 0.3275911 * ax)
    poly = t * (a1 + t * (a2 + t * (a3 + t * (a4 + t * a5))))
    y = 1.0 - poly * jnp.exp(-ax * ax)
    return jnp.where(x >= 0, y, -y)


def _gelu(x):
    return 0.5 * x * (1.0 + _erf_approx(x * (1.0 / math.sqrt(2.0))))


def _layernorm(x, g, b):
    mean = jnp.mean(x, axis=-1, keepdims=True)
    var = jnp.mean(jnp.square(x - mean), axis=-1, keepdims=True)
    return (x - mean) * lax.rsqrt(var + LN_EPS) * g + b


# --------------------------------- fused kernel --------------------------------------
def _bert_kernel(x_ref, bias_ref, emb_g_ref, emb_b_ref,
                 qkv_w_ref, qkv_b_ref, o_w_ref, o_b_ref,
                 ln1_g_ref, ln1_b_ref, i_w_ref, i_b_ref,
                 f_w_ref, f_b_ref, ln2_g_ref, ln2_b_ref,
                 cls_w_ref, cls_b_ref, out_ref, *, batch, seq):
    # Embedding LayerNorm (word+pos+type sum is precomputed in the wrapper).
    h = _layernorm(x_ref[...], emb_g_ref[...], emb_b_ref[...])          # (B*S, H) fp32

    # Additive attention mask, broadcast to batch*head major layout: (B*NH, 1, S).
    bias = bias_ref[...]                                                 # (B, 1, S)
    mb = jnp.concatenate(
        [bias[b:b + 1] for b in range(batch) for _ in range(NUM_HEADS)], axis=0)
    scale = 1.0 / math.sqrt(HEAD_DIM)

    def to_heads(t):   # (B*S, H) -> (B*NH, S, D), batch-major then head
        return jnp.stack(
            [t[b * seq:(b + 1) * seq, hh * HEAD_DIM:(hh + 1) * HEAD_DIM]
             for b in range(batch) for hh in range(NUM_HEADS)], axis=0)

    def from_heads(t):  # (B*NH, S, D) -> (B*S, H)
        return jnp.concatenate(
            [jnp.concatenate([t[b * NUM_HEADS + hh] for hh in range(NUM_HEADS)], axis=-1)
             for b in range(batch)], axis=0)

    for l in range(NUM_LAYERS):            # static unroll over the 2 encoder layers
        # ---- self-attention: fused QKV projection (one MXU pass, 96-lane output) ----
        qkv = jnp.dot(h, qkv_w_ref[l], preferred_element_type=jnp.float32) + qkv_b_ref[l]
        q = to_heads(qkv[:, 0 * HIDDEN:1 * HIDDEN])
        k = to_heads(qkv[:, 1 * HIDDEN:2 * HIDDEN])
        v = to_heads(qkv[:, 2 * HIDDEN:3 * HIDDEN])

        s = jnp.einsum('hqd,hkd->hqk', q, k,
                       preferred_element_type=jnp.float32) * scale + mb  # (B*NH, S, S)
        s = s - jnp.max(s, axis=-1, keepdims=True)
        p = jnp.exp(s)
        p = p / jnp.sum(p, axis=-1, keepdims=True)
        ctx = from_heads(jnp.einsum('hqk,hkd->hqd', p, v,
                                    preferred_element_type=jnp.float32))  # (B*S, H)

        # attention output projection + residual + LayerNorm (fused epilogue)
        attn_out = jnp.dot(ctx, o_w_ref[l], preferred_element_type=jnp.float32) + o_b_ref[l]
        h = _layernorm(attn_out + h, ln1_g_ref[l], ln1_b_ref[l])

        # ---- feed-forward: up-proj + GELU, down-proj + residual + LayerNorm ----
        ff = _gelu(jnp.dot(h, i_w_ref[l], preferred_element_type=jnp.float32) + i_b_ref[l])
        ff = jnp.dot(ff, f_w_ref[l], preferred_element_type=jnp.float32) + f_b_ref[l]
        h = _layernorm(ff + h, ln2_g_ref[l], ln2_b_ref[l])

    # Classifier on the CLS token (row b*seq of each sequence). cls_w is padded to
    # 128 output lanes so the store is lane-dense; the wrapper slices the real logits.
    cls = jnp.concatenate([h[b * seq:b * seq + 1, :] for b in range(batch)], axis=0)
    out_ref[...] = (jnp.dot(cls, cls_w_ref[...], preferred_element_type=jnp.float32)
                    + cls_b_ref[...]).astype(out_ref.dtype)
    # TODO(synk): BertModel's pooler is constructed in __init__ but unused by this forward; omitted.


# ------------------------------- model forward ---------------------------------------
def bert_classifier(packed, input_ids, attention_mask):
    # forward() truncates to 512 tokens; dropout layers are identity in eval mode.
    input_ids = input_ids[:, :512]
    attention_mask = attention_mask[:, :512]
    B, S = input_ids.shape

    # Embedding lookup + position/type sum: tiny dynamic gather, left to XLA.
    word = jnp.take(packed["word_emb"], input_ids, axis=0)               # (B, S, H)
    pos = packed["pos_emb"][:S]                                          # (S, H)
    tok = packed["type_emb"][0]                                          # token_type_ids == 0
    x = (word + pos[None, :, :] + tok[None, None, :]).reshape(B * S, HIDDEN)
    x = x.astype(jnp.float32)
    bias = ((1.0 - attention_mask.astype(jnp.float32)) * -1e9).reshape(B, 1, S)

    n_in = 18
    vmem = pltpu.MemorySpace.VMEM
    out_padded = pl.pallas_call(
        functools.partial(_bert_kernel, batch=B, seq=S),
        in_specs=[pl.BlockSpec(memory_space=vmem) for _ in range(n_in)],
        out_specs=pl.BlockSpec(memory_space=vmem),
        out_shape=jax.ShapeDtypeStruct((B, PAD_CLASSES), jnp.float32),
    )(x, bias,
      packed["emb_ln_g"], packed["emb_ln_b"],
      packed["qkv_w"], packed["qkv_b"], packed["o_w"], packed["o_b"],
      packed["ln1_g"], packed["ln1_b"], packed["i_w"], packed["i_b"],
      packed["f_w"], packed["f_b"], packed["ln2_g"], packed["ln2_b"],
      packed["cls_w_pad"], packed["cls_b_pad"])
    return out_padded[:, :NUM_CLASSES]


# ------------------------------ deterministic params ---------------------------------
def init_params(key):
    keys = iter(jax.random.split(key, 256))

    def normal(shape):
        return 0.02 * jax.random.normal(next(keys), shape, dtype=jnp.float32)

    params = {
        "word_emb": normal((VOCAB_SIZE, HIDDEN)),
        "pos_emb": normal((MAX_POS, HIDDEN)),
        "type_emb": normal((TYPE_VOCAB, HIDDEN)),
        "emb_ln_g": jnp.ones((HIDDEN,), jnp.float32),
        "emb_ln_b": jnp.zeros((HIDDEN,), jnp.float32),
        "cls_w": normal((HIDDEN, NUM_CLASSES)),
        "cls_b": jnp.zeros((NUM_CLASSES,), jnp.float32),
        "layers": [],
    }
    for _ in range(NUM_LAYERS):
        params["layers"].append({
            "q_w": normal((HIDDEN, HIDDEN)), "q_b": jnp.zeros((HIDDEN,), jnp.float32),
            "k_w": normal((HIDDEN, HIDDEN)), "k_b": jnp.zeros((HIDDEN,), jnp.float32),
            "v_w": normal((HIDDEN, HIDDEN)), "v_b": jnp.zeros((HIDDEN,), jnp.float32),
            "o_w": normal((HIDDEN, HIDDEN)), "o_b": jnp.zeros((HIDDEN,), jnp.float32),
            "ln1_g": jnp.ones((HIDDEN,), jnp.float32), "ln1_b": jnp.zeros((HIDDEN,), jnp.float32),
            "i_w": normal((HIDDEN, INTERMEDIATE)), "i_b": jnp.zeros((INTERMEDIATE,), jnp.float32),
            "f_w": normal((INTERMEDIATE, HIDDEN)), "f_b": jnp.zeros((HIDDEN,), jnp.float32),
            "ln2_g": jnp.ones((HIDDEN,), jnp.float32), "ln2_b": jnp.zeros((HIDDEN,), jnp.float32),
        })
    return params


def pack_params(p):
    """Stack per-layer weights along a leading layer axis, fuse QKV, pad the classifier."""
    def stack(f):
        return jnp.stack([f(lp) for lp in p["layers"]], axis=0)

    return {
        "word_emb": p["word_emb"],
        "pos_emb": p["pos_emb"],
        "type_emb": p["type_emb"],
        "emb_ln_g": p["emb_ln_g"].reshape(1, HIDDEN),
        "emb_ln_b": p["emb_ln_b"].reshape(1, HIDDEN),
        "qkv_w": stack(lambda lp: jnp.concatenate([lp["q_w"], lp["k_w"], lp["v_w"]], axis=1)),
        "qkv_b": stack(lambda lp: jnp.concatenate([lp["q_b"], lp["k_b"], lp["v_b"]]).reshape(1, 3 * HIDDEN)),
        "o_w": stack(lambda lp: lp["o_w"]),
        "o_b": stack(lambda lp: lp["o_b"].reshape(1, HIDDEN)),
        "ln1_g": stack(lambda lp: lp["ln1_g"].reshape(1, HIDDEN)),
        "ln1_b": stack(lambda lp: lp["ln1_b"].reshape(1, HIDDEN)),
        "i_w": stack(lambda lp: lp["i_w"]),
        "i_b": stack(lambda lp: lp["i_b"].reshape(1, INTERMEDIATE)),
        "f_w": stack(lambda lp: lp["f_w"]),
        "f_b": stack(lambda lp: lp["f_b"].reshape(1, HIDDEN)),
        "ln2_g": stack(lambda lp: lp["ln2_g"].reshape(1, HIDDEN)),
        "ln2_b": stack(lambda lp: lp["ln2_b"].reshape(1, HIDDEN)),
        "cls_w_pad": jnp.zeros((HIDDEN, PAD_CLASSES), jnp.float32).at[:, :NUM_CLASSES].set(p["cls_w"]),
        "cls_b_pad": jnp.zeros((1, PAD_CLASSES), jnp.float32).at[:, :NUM_CLASSES].set(p["cls_b"]),
    }


if __name__ == "__main__":
    key = jax.random.PRNGKey(0)
    pkey, dkey = jax.random.split(key)
    packed = pack_params(init_params(pkey))

    input_ids = jax.random.randint(dkey, (BATCH, SEQ), 0, VOCAB_SIZE, dtype=jnp.int32)
    attention_mask = jnp.ones((BATCH, SEQ), dtype=jnp.int32)   # options['attention_masks']

    logits = jax.jit(bert_classifier)(packed, input_ids, attention_mask)
    jax.block_until_ready(logits)
    assert logits.shape == (BATCH, NUM_CLASSES) and logits.dtype == jnp.float32
    print("KERNEL_OK")
</pallas_src>

<mosaic_0001>
module attributes {stable_mosaic.version = 11 : i64} {
  func.func @_bert_kernel(%arg0: memref<16x32xf32, #tpu.memory_space<vmem>>, %arg1: memref<2x1x8xf32, #tpu.memory_space<vmem>>, %arg2: memref<1x32xf32, #tpu.memory_space<vmem>>, %arg3: memref<1x32xf32, #tpu.memory_space<vmem>>, %arg4: memref<2x32x96xf32, #tpu.memory_space<vmem>>, %arg5: memref<2x1x96xf32, #tpu.memory_space<vmem>>, %arg6: memref<2x32x32xf32, #tpu.memory_space<vmem>>, %arg7: memref<2x1x32xf32, #tpu.memory_space<vmem>>, %arg8: memref<2x1x32xf32, #tpu.memory_space<vmem>>, %arg9: memref<2x1x32xf32, #tpu.memory_space<vmem>>, %arg10: memref<2x32x128xf32, #tpu.memory_space<vmem>>, %arg11: memref<2x1x128xf32, #tpu.memory_space<vmem>>, %arg12: memref<2x128x32xf32, #tpu.memory_space<vmem>>, %arg13: memref<2x1x32xf32, #tpu.memory_space<vmem>>, %arg14: memref<2x1x32xf32, #tpu.memory_space<vmem>>, %arg15: memref<2x1x32xf32, #tpu.memory_space<vmem>>, %arg16: memref<32x128xf32, #tpu.memory_space<vmem>>, %arg17: memref<1x128xf32, #tpu.memory_space<vmem>>, %arg18: memref<2x128xf32, #tpu.memory_space<vmem>>) attributes {dimension_semantics = [], scalar_prefetch = 0 : i64, scratch_operands = 0 : i64, tpu.core_type = #tpu.core_type<tc>} {
    %c0 = arith.constant 0 : index
    %c0_0 = arith.constant 0 : index
    %0 = vector.load %arg0[%c0, %c0_0] : memref<16x32xf32, #tpu.memory_space<vmem>>, vector<16x32xf32>
    %c0_1 = arith.constant 0 : index
    %c0_2 = arith.constant 0 : index
    %1 = vector.load %arg2[%c0_1, %c0_2] : memref<1x32xf32, #tpu.memory_space<vmem>>, vector<1x32xf32>
    %c0_3 = arith.constant 0 : index
    %c0_4 = arith.constant 0 : index
    %2 = vector.load %arg3[%c0_3, %c0_4] : memref<1x32xf32, #tpu.memory_space<vmem>>, vector<1x32xf32>
    %cst = arith.constant dense<0.000000e+00> : vector<16xf32>
    %3 = vector.multi_reduction <add>, %0, %cst [1] : vector<16x32xf32> to vector<16xf32>
    %4 = vector.shape_cast %3 : vector<16xf32> to vector<16x1xf32>
    %cst_5 = arith.constant 3.200000e+01 : f32
    %5 = vector.broadcast %cst_5 : f32 to vector<16x1xf32>
    %6 = arith.divf %4, %5 : vector<16x1xf32>
    %7 = vector.broadcast %6 : vector<16x1xf32> to vector<16x32xf32>
    %8 = arith.subf %0, %7 : vector<16x32xf32>
    %9 = arith.mulf %8, %8 : vector<16x32xf32>
    %cst_6 = arith.constant dense<0.000000e+00> : vector<16xf32>
    %10 = vector.multi_reduction <add>, %9, %cst_6 [1] : vector<16x32xf32> to vector<16xf32>
    %11 = vector.shape_cast %10 : vector<16xf32> to vector<16x1xf32>
    %cst_7 = arith.constant 3.200000e+01 : f32
    %12 = vector.broadcast %cst_7 : f32 to vector<16x1xf32>
    %13 = arith.divf %11, %12 : vector<16x1xf32>
    %14 = vector.broadcast %6 : vector<16x1xf32> to vector<16x32xf32>
    %15 = arith.subf %0, %14 : vector<16x32xf32>
    %cst_8 = arith.constant 9.99999996E-13 : f32
    %16 = vector.broadcast %cst_8 : f32 to vector<16x1xf32>
    %17 = arith.addf %13, %16 : vector<16x1xf32>
    %18 = math.rsqrt %17 : vector<16x1xf32>
    %19 = vector.broadcast %18 : vector<16x1xf32> to vector<16x32xf32>
    %20 = arith.mulf %15, %19 : vector<16x32xf32>
    %21 = vector.broadcast %1 : vector<1x32xf32> to vector<16x32xf32>
    %22 = arith.mulf %20, %21 : vector<16x32xf32>
    %23 = vector.broadcast %2 : vector<1x32xf32> to vector<16x32xf32>
    %24 = arith.addf %22, %23 : vector<16x32xf32>
    %c0_9 = arith.constant 0 : index
    %c0_10 = arith.constant 0 : index
    %c0_11 = arith.constant 0 : index
    %25 = vector.load %arg1[%c0_9, %c0_10, %c0_11] : memref<2x1x8xf32, #tpu.memory_space<vmem>>, vector<2x1x8xf32>
    %26 = vector.extract_strided_slice %25 {offsets = [0, 0, 0], sizes = [1, 1, 8], strides = [1, 1, 1]} : vector<2x1x8xf32> to vector<1x1x8xf32>
    %27 = vector.extract_strided_slice %25 {offsets = [0, 0, 0], sizes = [1, 1, 8], strides = [1, 1, 1]} : vector<2x1x8xf32> to vector<1x1x8xf32>
    %28 = vector.extract_strided_slice %25 {offsets = [0, 0, 0], sizes = [1, 1, 8], strides = [1, 1, 1]} : vector<2x1x8xf32> to vector<1x1x8xf32>
    %29 = vector.extract_strided_slice %25 {offsets = [0, 0, 0], sizes = [1, 1, 8], strides = [1, 1, 1]} : vector<2x1x8xf32> to vector<1x1x8xf32>
    %30 = vector.extract_strided_slice %25 {offsets = [1, 0, 0], sizes = [1, 1, 8], strides = [1, 1, 1]} : vector<2x1x8xf32> to vector<1x1x8xf32>
    %31 = vector.extract_strided_slice %25 {offsets = [1, 0, 0], sizes = [1, 1, 8], strides = [1, 1, 1]} : vector<2x1x8xf32> to vector<1x1x8xf32>
    %32 = vector.extract_strided_slice %25 {offsets = [1, 0, 0], sizes = [1, 1, 8], strides = [1, 1, 1]} : vector<2x1x8xf32> to vector<1x1x8xf32>
    %33 = vector.extract_strided_slice %25 {offsets = [1, 0, 0], sizes = [1, 1, 8], strides = [1, 1, 1]} : vector<2x1x8xf32> to vector<1x1x8xf32>
    %34 = tpu.concatenate %26, %27, %28, %29, %30, %31, %32, %33 in 0 : vector<1x1x8xf32>, vector<1x1x8xf32>, vector<1x1x8xf32>, vector<1x1x8xf32>, vector<1x1x8xf32>, vector<1x1x8xf32>, vector<1x1x8xf32>, vector<1x1x8xf32> -> vector<8x1x8xf32>
    %c0_12 = arith.constant 0 : index
    %c0_13 = arith.constant 0 : index
    %c0_14 = arith.constant 0 : index
    %35 = vector.load %arg4[%c0_12, %c0_13, %c0_14] : memref<2x32x96xf32, #tpu.memory_space<vmem>>, vector<1x32x96xf32>
    %36 = vector.shape_cast %35 : vector<1x32x96xf32> to vector<32x96xf32>
    %cst_15 = arith.constant dense<0.000000e+00> : vector<16x96xf32>
    %37 = tpu.matmul %24, %36, %cst_15 {dimension_numbers = #tpu.dot_dimension_numbers<[1], [0], [0], [1], [0, 0, 1, 1], [], []>} : vector<16x32xf32>, vector<32x96xf32>, vector<16x96xf32> -> vector<16x96xf32>
    %c0_16 = arith.constant 0 : index
    %c0_17 = arith.constant 0 : index
    %c0_18 = arith.constant 0 : index
    %38 = vector.load %arg5[%c0_16, %c0_17, %c0_18] : memref<2x1x96xf32, #tpu.memory_space<vmem>>, vector<1x1x96xf32>
    %39 = vector.shape_cast %38 : vector<1x1x96xf32> to vector<1x96xf32>
    %40 = vector.broadcast %39 : vector<1x96xf32> to vector<16x96xf32>
    %41 = arith.addf %37, %40 : vector<16x96xf32>
    %42 = vector.extract_strided_slice %41 {offsets = [0, 0], sizes = [16, 32], strides = [1, 1]} : vector<16x96xf32> to vector<16x32xf32>
    %43 = vector.extract_strided_slice %42 {offsets = [0, 0], sizes = [8, 8], strides = [1, 1]} : vector<16x32xf32> to vector<8x8xf32>
    %44 = vector.extract_strided_slice %42 {offsets = [0, 8], sizes = [8, 8], strides = [1, 1]} : vector<16x32xf32> to vector<8x8xf32>
    %45 = vector.extract_strided_slice %42 {offsets = [0, 16], sizes = [8, 8], strides = [1, 1]} : vector<16x32xf32> to vector<8x8xf32>
    %46 = vector.extract_strided_slice %42 {offsets = [0, 24], sizes = [8, 8], strides = [1, 1]} : vector<16x32xf32> to vector<8x8xf32>
    %47 = vector.extract_strided_slice %42 {offsets = [8, 0], sizes = [8, 8], strides = [1, 1]} : vector<16x32xf32> to vector<8x8xf32>
    %48 = vector.extract_strided_slice %42 {offsets = [8, 8], sizes = [8, 8], strides = [1, 1]} : vector<16x32xf32> to vector<8x8xf32>
    %49 = vector.extract_strided_slice %42 {offsets = [8, 16], sizes = [8, 8], strides = [1, 1]} : vector<16x32xf32> to vector<8x8xf32>
    %50 = vector.extract_strided_slice %42 {offsets = [8, 24], sizes = [8, 8], strides = [1, 1]} : vector<16x32xf32> to vector<8x8xf32>
    %51 = vector.shape_cast %43 : vector<8x8xf32> to vector<1x8x8xf32>
    %52 = vector.shape_cast %44 : vector<8x8xf32> to vector<1x8x8xf32>
    %53 = vector.shape_cast %45 : vector<8x8xf32> to vector<1x8x8xf32>
    %54 = vector.shape_cast %46 : vector<8x8xf32> to vector<1x8x8xf32>
    %55 = vector.shape_cast %47 : vector<8x8xf32> to vector<1x8x8xf32>
    %56 = vector.shape_cast %48 : vector<8x8xf32> to vector<1x8x8xf32>
    %57 = vector.shape_cast %49 : vector<8x8xf32> to vector<1x8x8xf32>
    %58 = vector.shape_cast %50 : vector<8x8xf32> to vector<1x8x8xf32>
    %59 = tpu.concatenate %51, %52, %53, %54, %55, %56, %57, %58 in 0 : vector<1x8x8xf32>, vector<1x8x8xf32>, vector<1x8x8xf32>, vector<1x8x8xf32>, vector<1x8x8xf32>, vector<1x8x8xf32>, vector<1x8x8xf32>, vector<1x8x8xf32> -> vector<8x8x8xf32>
    %60 = vector.extract_strided_slice %41 {offsets = [0, 32], sizes = [16, 32], strides = [1, 1]} : vector<16x96xf32> to vector<16x32xf32>
    %61 = vector.extract_strided_slice %60 {offsets = [0, 0], sizes = [8, 8], strides = [1, 1]} : vector<16x32xf32> to vector<8x8xf32>
    %62 = vector.extract_strided_slice %60 {offsets = [0, 8], sizes = [8, 8], strides = [1, 1]} : vector<16x32xf32> to vector<8x8xf32>
    %63 = vector.extract_strided_slice %60 {offsets = [0, 16], sizes = [8, 8], strides = [1, 1]} : vector<16x32xf32> to vector<8x8xf32>
    %64 = vector.extract_strided_slice %60 {offsets = [0, 24], sizes = [8, 8], strides = [1, 1]} : vector<16x32xf32> to vector<8x8xf32>
    %65 = vector.extract_strided_slice %60 {offsets = [8, 0], sizes = [8, 8], strides = [1, 1]} : vector<16x32xf32> to vector<8x8xf32>
    %66 = vector.extract_strided_slice %60 {offsets = [8, 8], sizes = [8, 8], strides = [1, 1]} : vector<16x32xf32> to vector<8x8xf32>
    %67 = vector.extract_strided_slice %60 {offsets = [8, 16], sizes = [8, 8], strides = [1, 1]} : vector<16x32xf32> to vector<8x8xf32>
    %68 = vector.extract_strided_slice %60 {offsets = [8, 24], sizes = [8, 8], strides = [1, 1]} : vector<16x32xf32> to vector<8x8xf32>
    %69 = vector.shape_cast %61 : vector<8x8xf32> to vector<1x8x8xf32>
    %70 = vector.shape_cast %62 : vector<8x8xf32> to vector<1x8x8xf32>
    %71 = vector.shape_cast %63 : vector<8x8xf32> to vector<1x8x8xf32>
    %72 = vector.shape_cast %64 : vector<8x8xf32> to vector<1x8x8xf32>
    %73 = vector.shape_cast %65 : vector<8x8xf32> to vector<1x8x8xf32>
    %74 = vector.shape_cast %66 : vector<8x8xf32> to vector<1x8x8xf32>
    %75 = vector.shape_cast %67 : vector<8x8xf32> to vector<1x8x8xf32>
    %76 = vector.shape_cast %68 : vector<8x8xf32> to vector<1x8x8xf32>
    %77 = tpu.concatenate %69, %70, %71, %72, %73, %74, %75, %76 in 0 : vector<1x8x8xf32>, vector<1x8x8xf32>, vector<1x8x8xf32>, vector<1x8x8xf32>, vector<1x8x8xf32>, vector<1x8x8xf32>, vector<1x8x8xf32>, vector<1x8x8xf32> -> vector<8x8x8xf32>
    %78 = vector.extract_strided_slice %41 {offsets = [0, 64], sizes = [16, 32], strides = [1, 1]} : vector<16x96xf32> to vector<16x32xf32>
    %79 = vector.extract_strided_slice %78 {offsets = [0, 0], sizes = [8, 8], strides = [1, 1]} : vector<16x32xf32> to vector<8x8xf32>
    %80 = vector.extract_strided_slice %78 {offsets = [0, 8], sizes = [8, 8], strides = [1, 1]} : vector<16x32xf32> to vector<8x8xf32>
    %81 = vector.extract_strided_slice %78 {offsets = [0, 16], sizes = [8, 8], strides = [1, 1]} : vector<16x32xf32> to vector<8x8xf32>
    %82 = vector.extract_strided_slice %78 {offsets = [0, 24], sizes = [8, 8], strides = [1, 1]} : vector<16x32xf32> to vector<8x8xf32>
    %83 = vector.extract_strided_slice %78 {offsets = [8, 0], sizes = [8, 8], strides = [1, 1]} : vector<16x32xf32> to vector<8x8xf32>
    %84 = vector.extract_strided_slice %78 {offsets = [8, 8], sizes = [8, 8], strides = [1, 1]} : vector<16x32xf32> to vector<8x8xf32>
    %85 = vector.extract_strided_slice %78 {offsets = [8, 16], sizes = [8, 8], strides = [1, 1]} : vector<16x32xf32> to vector<8x8xf32>
    %86 = vector.extract_strided_slice %78 {offsets = [8, 24], sizes = [8, 8], strides = [1, 1]} : vector<16x32xf32> to vector<8x8xf32>
    %87 = vector.shape_cast %79 : vector<8x8xf32> to vector<1x8x8xf32>
    %88 = vector.shape_cast %80 : vector<8x8xf32> to vector<1x8x8xf32>
    %89 = vector.shape_cast %81 : vector<8x8xf32> to vector<1x8x8xf32>
    %90 = vector.shape_cast %82 : vector<8x8xf32> to vector<1x8x8xf32>
    %91 = vector.shape_cast %83 : vector<8x8xf32> to vector<1x8x8xf32>
    %92 = vector.shape_cast %84 : vector<8x8xf32> to vector<1x8x8xf32>
    %93 = vector.shape_cast %85 : vector<8x8xf32> to vector<1x8x8xf32>
    %94 = vector.shape_cast %86 : vector<8x8xf32> to vector<1x8x8xf32>
    %95 = tpu.concatenate %87, %88, %89, %90, %91, %92, %93, %94 in 0 : vector<1x8x8xf32>, vector<1x8x8xf32>, vector<1x8x8xf32>, vector<1x8x8xf32>, vector<1x8x8xf32>, vector<1x8x8xf32>, vector<1x8x8xf32>, vector<1x8x8xf32> -> vector<8x8x8xf32>
    "tpu.trace_start"() <{level = 10 : i32, message = "hqd,hkd->hqk"}> : () -> ()
    %cst_19 = arith.constant dense<0.000000e+00> : vector<8x8x8xf32>
    %96 = tpu.matmul %59, %77, %cst_19 {dimension_numbers = #tpu.dot_dimension_numbers<[2], [2], [1], [1], [0, 0, 0, 1, 1, 1], [0], [0]>} : vector<8x8x8xf32>, vector<8x8x8xf32>, vector<8x8x8xf32> -> vector<8x8x8xf32>
    "tpu.trace_stop"() : () -> ()
    %cst_20 = arith.constant 0.353553385 : f32
    %97 = vector.broadcast %cst_20 : f32 to vector<8x8x8xf32>
    %98 = arith.mulf %96, %97 : vector<8x8x8xf32>
    %99 = vector.broadcast %34 : vector<8x1x8xf32> to vector<8x8x8xf32>
    %100 = arith.addf %98, %99 : vector<8x8x8xf32>
    %cst_21 = arith.constant dense<0xFF800000> : vector<8x8xf32>
    %101 = vector.multi_reduction <maximumf>, %100, %cst_21 [2] : vector<8x8x8xf32> to vector<8x8xf32>
    %102 = vector.shape_cast %101 : vector<8x8xf32> to vector<8x8x1xf32>
    %103 = vector.broadcast %102 : vector<8x8x1xf32> to vector<8x8x8xf32>
    %104 = arith.subf %100, %103 : vector<8x8x8xf32>
    %105 = math.exp %104 : vector<8x8x8xf32>
    %cst_22 = arith.constant dense<0.000000e+00> : vector<8x8xf32>
    %106 = vector.multi_reduction <add>, %105, %cst_22 [2] : vector<8x8x8xf32> to vector<8x8xf32>
    %107 = vector.shape_cast %106 : vector<8x8xf32> to vector<8x8x1xf32>
    %108 = vector.broadcast %107 : vector<8x8x1xf32> to vector<8x8x8xf32>
    %109 = arith.divf %105, %108 : vector<8x8x8xf32>
    "tpu.trace_start"() <{level = 10 : i32, message = "hqk,hkd->hqd"}> : () -> ()
    %cst_23 = arith.constant dense<0.000000e+00> : vector<8x8x8xf32>
    %110 = tpu.matmul %109, %95, %cst_23 {dimension_numbers = #tpu.dot_dimension_numbers<[2], [1], [1], [2], [0, 0, 0, 1, 1, 2], [0], [0]>} : vector<8x8x8xf32>, vector<8x8x8xf32>, vector<8x8x8xf32> -> vector<8x8x8xf32>
    "tpu.trace_stop"() : () -> ()
    %111 = vector.extract_strided_slice %110 {offsets = [0, 0, 0], sizes = [1, 8, 8], strides = [1, 1, 1]} : vector<8x8x8xf32> to vector<1x8x8xf32>
    %112 = vector.shape_cast %111 : vector<1x8x8xf32> to vector<8x8xf32>
    %113 = vector.extract_strided_slice %110 {offsets = [1, 0, 0], sizes = [1, 8, 8], strides = [1, 1, 1]} : vector<8x8x8xf32> to vector<1x8x8xf32>
    %114 = vector.shape_cast %113 : vector<1x8x8xf32> to vector<8x8xf32>
    %115 = vector.extract_strided_slice %110 {offsets = [2, 0, 0], sizes = [1, 8, 8], strides = [1, 1, 1]} : vector<8x8x8xf32> to vector<1x8x8xf32>
    %116 = vector.shape_cast %115 : vector<1x8x8xf32> to vector<8x8xf32>
    %117 = vector.extract_strided_slice %110 {offsets = [3, 0, 0], sizes = [1, 8, 8], strides = [1, 1, 1]} : vector<8x8x8xf32> to vector<1x8x8xf32>
    %118 = vector.shape_cast %117 : vector<1x8x8xf32> to vector<8x8xf32>
    %119 = tpu.concatenate %112, %114, %116, %118 in 1 : vector<8x8xf32>, vector<8x8xf32>, vector<8x8xf32>, vector<8x8xf32> -> vector<8x32xf32>
    %120 = vector.extract_strided_slice %110 {offsets = [4, 0, 0], sizes = [1, 8, 8], strides = [1, 1, 1]} : vector<8x8x8xf32> to vector<1x8x8xf32>
    %121 = vector.shape_cast %120 : vector<1x8x8xf32> to vector<8x8xf32>
    %122 = vector.extract_strided_slice %110 {offsets = [5, 0, 0], sizes = [1, 8, 8], strides = [1, 1, 1]} : vector<8x8x8xf32> to vector<1x8x8xf32>
    %123 = vector.shape_cast %122 : vector<1x8x8xf32> to vector<8x8xf32>
    %124 = vector.extract_strided_slice %110 {offsets = [6, 0, 0], sizes = [1, 8, 8], strides = [1, 1, 1]} : vector<8x8x8xf32> to vector<1x8x8xf32>
    %125 = vector.shape_cast %124 : vector<1x8x8xf32> to vector<8x8xf32>
    %126 = vector.extract_strided_slice %110 {offsets = [7, 0, 0], sizes = [1, 8, 8], strides = [1, 1, 1]} : vector<8x8x8xf32> to vector<1x8x8xf32>
    %127 = vector.shape_cast %126 : vector<1x8x8xf32> to vector<8x8xf32>
    %128 = tpu.concatenate %121, %123, %125, %127 in 1 : vector<8x8xf32>, vector<8x8xf32>, vector<8x8xf32>, vector<8x8xf32> -> vector<8x32xf32>
    %129 = tpu.concatenate %119, %128 in 0 : vector<8x32xf32>, vector<8x32xf32> -> vector<16x32xf32>
    %c0_24 = arith.constant 0 : index
    %c0_25 = arith.constant 0 : index
    %c0_26 = arith.constant 0 : index
    %130 = vector.load %arg6[%c0_24, %c0_25, %c0_26] : memref<2x32x32xf32, #tpu.memory_space<vmem>>, vector<1x32x32xf32>
    %131 = vector.shape_cast %130 : vector<1x32x32xf32> to vector<32x32xf32>
    %cst_27 = arith.constant dense<0.000000e+00> : vector<16x32xf32>
    %132 = tpu.matmul %129, %131, %cst_27 {dimension_numbers = #tpu.dot_dimension_numbers<[1], [0], [0], [1], [0, 0, 1, 1], [], []>} : vector<16x32xf32>, vector<32x32xf32>, vector<16x32xf32> -> vector<16x32xf32>
    %c0_28 = arith.constant 0 : index
    %c0_29 = arith.constant 0 : index
    %c0_30 = arith.constant 0 : index
    %133 = vector.load %arg7[%c0_28, %c0_29, %c0_30] : memref<2x1x32xf32, #tpu.memory_space<vmem>>, vector<1x1x32xf32>
    %134 = vector.shape_cast %133 : vector<1x1x32xf32> to vector<1x32xf32>
    %135 = vector.broadcast %134 : vector<1x32xf32> to vector<16x32xf32>
    %136 = arith.addf %132, %135 : vector<16x32xf32>
    %137 = arith.addf %136, %24 : vector<16x32xf32>
    %c0_31 = arith.constant 0 : index
    %c0_32 = arith.constant 0 : index
    %c0_33 = arith.constant 0 : index
    %138 = vector.load %arg8[%c0_31, %c0_32, %c0_33] : memref<2x1x32xf32, #tpu.memory_space<vmem>>, vector<1x1x32xf32>
    %139 = vector.shape_cast %138 : vector<1x1x32xf32> to vector<1x32xf32>
    %c0_34 = arith.constant 0 : index
    %c0_35 = arith.constant 0 : index
    %c0_36 = arith.constant 0 : index
    %140 = vector.load %arg9[%c0_34, %c0_35, %c0_36] : memref<2x1x32xf32, #tpu.memory_space<vmem>>, vector<1x1x32xf32>
    %141 = vector.shape_cast %140 : vector<1x1x32xf32> to vector<1x32xf32>
    %cst_37 = arith.constant dense<0.000000e+00> : vector<16xf32>
    %142 = vector.multi_reduction <add>, %137, %cst_37 [1] : vector<16x32xf32> to vector<16xf32>
    %143 = vector.shape_cast %142 : vector<16xf32> to vector<16x1xf32>
    %cst_38 = arith.constant 3.200000e+01 : f32
    %144 = vector.broadcast %cst_38 : f32 to vector<16x1xf32>
    %145 = arith.divf %143, %144 : vector<16x1xf32>
    %146 = vector.broadcast %145 : vector<16x1xf32> to vector<16x32xf32>
    %147 = arith.subf %137, %146 : vector<16x32xf32>
    %148 = arith.mulf %147, %147 : vector<16x32xf32>
    %cst_39 = arith.constant dense<0.000000e+00> : vector<16xf32>
    %149 = vector.multi_reduction <add>, %148, %cst_39 [1] : vector<16x32xf32> to vector<16xf32>
    %150 = vector.shape_cast %149 : vector<16xf32> to vector<16x1xf32>
    %cst_40 = arith.constant 3.200000e+01 : f32
    %151 = vector.broadcast %cst_40 : f32 to vector<16x1xf32>
    %152 = arith.divf %150, %151 : vector<16x1xf32>
    %153 = vector.broadcast %145 : vector<16x1xf32> to vector<16x32xf32>
    %154 = arith.subf %137, %153 : vector<16x32xf32>
    %cst_41 = arith.constant 9.99999996E-13 : f32
    %155 = vector.broadcast %cst_41 : f32 to vector<16x1xf32>
    %156 = arith.addf %152, %155 : vector<16x1xf32>
    %157 = math.rsqrt %156 : vector<16x1xf32>
    %158 = vector.broadcast %157 : vector<16x1xf32> to vector<16x32xf32>
    %159 = arith.mulf %154, %158 : vector<16x32xf32>
    %160 = vector.broadcast %139 : vector<1x32xf32> to vector<16x32xf32>
    %161 = arith.mulf %159, %160 : vector<16x32xf32>
    %162 = vector.broadcast %141 : vector<1x32xf32> to vector<16x32xf32>
    %163 = arith.addf %161, %162 : vector<16x32xf32>
    %c0_42 = arith.constant 0 : index
    %c0_43 = arith.constant 0 : index
    %c0_44 = arith.constant 0 : index
    %164 = vector.load %arg10[%c0_42, %c0_43, %c0_44] : memref<2x32x128xf32, #tpu.memory_space<vmem>>, vector<1x32x128xf32>
    %165 = vector.shape_cast %164 : vector<1x32x128xf32> to vector<32x128xf32>
    %cst_45 = arith.constant dense<0.000000e+00> : vector<16x128xf32>
    %166 = tpu.matmul %163, %165, %cst_45 {dimension_numbers = #tpu.dot_dimension_numbers<[1], [0], [0], [1], [0, 0, 1, 1], [], []>} : vector<16x32xf32>, vector<32x128xf32>, vector<16x128xf32> -> vector<16x128xf32>
    %c0_46 = arith.constant 0 : index
    %c0_47 = arith.constant 0 : index
    %c0_48 = arith.constant 0 : index
    %167 = vector.load %arg11[%c0_46, %c0_47, %c0_48] : memref<2x1x128xf32, #tpu.memory_space<vmem>>, vector<1x1x128xf32>
    %168 = vector.shape_cast %167 : vector<1x1x128xf32> to vector<1x128xf32>
    %169 = vector.broadcast %168 : vector<1x128xf32> to vector<16x128xf32>
    %170 = arith.addf %166, %169 : vector<16x128xf32>
    %cst_49 = arith.constant 5.000000e-01 : f32
    %171 = vector.broadcast %cst_49 : f32 to vector<16x128xf32>
    %172 = arith.mulf %171, %170 : vector<16x128xf32>
    %cst_50 = arith.constant 0.707106769 : f32
    %173 = vector.broadcast %cst_50 : f32 to vector<16x128xf32>
    %174 = arith.mulf %170, %173 : vector<16x128xf32>
    %175 = math.absf %174 : vector<16x128xf32>
    %cst_51 = arith.constant 0.327591091 : f32
    %176 = vector.broadcast %cst_51 : f32 to vector<16x128xf32>
    %177 = arith.mulf %176, %175 : vector<16x128xf32>
    %cst_52 = arith.constant 1.000000e+00 : f32
    %178 = vector.broadcast %cst_52 : f32 to vector<16x128xf32>
    %179 = arith.addf %178, %177 : vector<16x128xf32>
    %cst_53 = arith.constant 1.000000e+00 : f32
    %180 = vector.broadcast %cst_53 : f32 to vector<16x128xf32>
    %181 = arith.divf %180, %179 : vector<16x128xf32>
    %cst_54 = arith.constant 1.06140542 : f32
    %182 = vector.broadcast %cst_54 : f32 to vector<16x128xf32>
    %183 = arith.mulf %181, %182 : vector<16x128xf32>
    %cst_55 = arith.constant -1.45315206 : f32
    %184 = vector.broadcast %cst_55 : f32 to vector<16x128xf32>
    %185 = arith.addf %184, %183 : vector<16x128xf32>
    %186 = arith.mulf %181, %185 : vector<16x128xf32>
    %cst_56 = arith.constant 1.42141378 : f32
    %187 = vector.broadcast %cst_56 : f32 to vector<16x128xf32>
    %188 = arith.addf %187, %186 : vector<16x128xf32>
    %189 = arith.mulf %181, %188 : vector<16x128xf32>
    %cst_57 = arith.constant -0.284496725 : f32
    %190 = vector.broadcast %cst_57 : f32 to vector<16x128xf32>
    %191 = arith.addf %190, %189 : vector<16x128xf32>
    %192 = arith.mulf %181, %191 : vector<16x128xf32>
    %cst_58 = arith.constant 0.254829586 : f32
    %193 = vector.broadcast %cst_58 : f32 to vector<16x128xf32>
    %194 = arith.addf %193, %192 : vector<16x128xf32>
    %195 = arith.mulf %181, %194 : vector<16x128xf32>
    %cst_59 = arith.constant 0.000000e+00 : f32
    %196 = vector.broadcast %cst_59 : f32 to vector<16x128xf32>
    %197 = arith.subf %196, %175 : vector<16x128xf32>
    %198 = arith.mulf %197, %175 : vector<16x128xf32>
    %199 = math.exp %198 : vector<16x128xf32>
    %200 = arith.mulf %195, %199 : vector<16x128xf32>
    %cst_60 = arith.constant 1.000000e+00 : f32
    %201 = vector.broadcast %cst_60 : f32 to vector<16x128xf32>
    %202 = arith.subf %201, %200 : vector<16x128xf32>
    %cst_61 = arith.constant 0.000000e+00 : f32
    %203 = vector.broadcast %cst_61 : f32 to vector<16x128xf32>
    %204 = arith.cmpf oge, %174, %203 : vector<16x128xf32>
    %cst_62 = arith.constant 0.000000e+00 : f32
    %205 = vector.broadcast %cst_62 : f32 to vector<16x128xf32>
    %206 = arith.subf %205, %202 : vector<16x128xf32>
    %207 = arith.select %204, %202, %206 : vector<16x128xi1>, vector<16x128xf32>
    %cst_63 = arith.constant 1.000000e+00 : f32
    %208 = vector.broadcast %cst_63 : f32 to vector<16x128xf32>
    %209 = arith.addf %208, %207 : vector<16x128xf32>
    %210 = arith.mulf %172, %209 : vector<16x128xf32>
    %c0_64 = arith.constant 0 : index
    %c0_65 = arith.constant 0 : index
    %c0_66 = arith.constant 0 : index
    %211 = vector.load %arg12[%c0_64, %c0_65, %c0_66] : memref<2x128x32xf32, #tpu.memory_space<vmem>>, vector<1x128x32xf32>
    %212 = vector.shape_cast %211 : vector<1x128x32xf32> to vector<128x32xf32>
    %cst_67 = arith.constant dense<0.000000e+00> : vector<16x32xf32>
    %213 = tpu.matmul %210, %212, %cst_67 {dimension_numbers = #tpu.dot_dimension_numbers<[1], [0], [0], [1], [0, 0, 1, 1], [], []>} : vector<16x128xf32>, vector<128x32xf32>, vector<16x32xf32> -> vector<16x32xf32>
    %c0_68 = arith.constant 0 : index
    %c0_69 = arith.constant 0 : index
    %c0_70 = arith.constant 0 : index
    %214 = vector.load %arg13[%c0_68, %c0_69, %c0_70] : memref<2x1x32xf32, #tpu.memory_space<vmem>>, vector<1x1x32xf32>
    %215 = vector.shape_cast %214 : vector<1x1x32xf32> to vector<1x32xf32>
    %216 = vector.broadcast %215 : vector<1x32xf32> to vector<16x32xf32>
    %217 = arith.addf %213, %216 : vector<16x32xf32>
    %218 = arith.addf %217, %163 : vector<16x32xf32>
    %c0_71 = arith.constant 0 : index
    %c0_72 = arith.constant 0 : index
    %c0_73 = arith.constant 0 : index
    %219 = vector.load %arg14[%c0_71, %c0_72, %c0_73] : memref<2x1x32xf32, #tpu.memory_space<vmem>>, vector<1x1x32xf32>
    %220 = vector.shape_cast %219 : vector<1x1x32xf32> to vector<1x32xf32>
    %c0_74 = arith.constant 0 : index
    %c0_75 = arith.constant 0 : index
    %c0_76 = arith.constant 0 : index
    %221 = vector.load %arg15[%c0_74, %c0_75, %c0_76] : memref<2x1x32xf32, #tpu.memory_space<vmem>>, vector<1x1x32xf32>
    %222 = vector.shape_cast %221 : vector<1x1x32xf32> to vector<1x32xf32>
    %cst_77 = arith.constant dense<0.000000e+00> : vector<16xf32>
    %223 = vector.multi_reduction <add>, %218, %cst_77 [1] : vector<16x32xf32> to vector<16xf32>
    %224 = vector.shape_cast %223 : vector<16xf32> to vector<16x1xf32>
    %cst_78 = arith.constant 3.200000e+01 : f32
    %225 = vector.broadcast %cst_78 : f32 to vector<16x1xf32>
    %226 = arith.divf %224, %225 : vector<16x1xf32>
    %227 = vector.broadcast %226 : vector<16x1xf32> to vector<16x32xf32>
    %228 = arith.subf %218, %227 : vector<16x32xf32>
    %229 = arith.mulf %228, %228 : vector<16x32xf32>
    %cst_79 = arith.constant dense<0.000000e+00> : vector<16xf32>
    %230 = vector.multi_reduction <add>, %229, %cst_79 [1] : vector<16x32xf32> to vector<16xf32>
    %231 = vector.shape_cast %230 : vector<16xf32> to vector<16x1xf32>
    %cst_80 = arith.constant 3.200000e+01 : f32
    %232 = vector.broadcast %cst_80 : f32 to vector<16x1xf32>
    %233 = arith.divf %231, %232 : vector<16x1xf32>
    %234 = vector.broadcast %226 : vector<16x1xf32> to vector<16x32xf32>
    %235 = arith.subf %218, %234 : vector<16x32xf32>
    %cst_81 = arith.constant 9.99999996E-13 : f32
    %236 = vector.broadcast %cst_81 : f32 to vector<16x1xf32>
    %237 = arith.addf %233, %236 : vector<16x1xf32>
    %238 = math.rsqrt %237 : vector<16x1xf32>
    %239 = vector.broadcast %238 : vector<16x1xf32> to vector<16x32xf32>
    %240 = arith.mulf %235, %239 : vector<16x32xf32>
    %241 = vector.broadcast %220 : vector<1x32xf32> to vector<16x32xf32>
    %242 = arith.mulf %240, %241 : vector<16x32xf32>
    %243 = vector.broadcast %222 : vector<1x32xf32> to vector<16x32xf32>
    %244 = arith.addf %242, %243 : vector<16x32xf32>
    %c1 = arith.constant 1 : index
    %c0_82 = arith.constant 0 : index
    %c0_83 = arith.constant 0 : index
    %245 = vector.load %arg4[%c1, %c0_82, %c0_83] : memref<2x32x96xf32, #tpu.memory_space<vmem>>, vector<1x32x96xf32>
    %246 = vector.shape_cast %245 : vector<1x32x96xf32> to vector<32x96xf32>
    %cst_84 = arith.constant dense<0.000000e+00> : vector<16x96xf32>
    %247 = tpu.matmul %244, %246, %cst_84 {dimension_numbers = #tpu.dot_dimension_numbers<[1], [0], [0], [1], [0, 0, 1, 1], [], []>} : vector<16x32xf32>, vector<32x96xf32>, vector<16x96xf32> -> vector<16x96xf32>
    %c1_85 = arith.constant 1 : index
    %c0_86 = arith.constant 0 : index
    %c0_87 = arith.constant 0 : index
    %248 = vector.load %arg5[%c1_85, %c0_86, %c0_87] : memref<2x1x96xf32, #tpu.memory_space<vmem>>, vector<1x1x96xf32>
    %249 = vector.shape_cast %248 : vector<1x1x96xf32> to vector<1x96xf32>
    %250 = vector.broadcast %249 : vector<1x96xf32> to vector<16x96xf32>
    %251 = arith.addf %247, %250 : vector<16x96xf32>
    %252 = vector.extract_strided_slice %251 {offsets = [0, 0], sizes = [16, 32], strides = [1, 1]} : vector<16x96xf32> to vector<16x32xf32>
    %253 = vector.extract_strided_slice %252 {offsets = [0, 0], sizes = [8, 8], strides = [1, 1]} : vector<16x32xf32> to vector<8x8xf32>
    %254 = vector.extract_strided_slice %252 {offsets = [0, 8], sizes = [8, 8], strides = [1, 1]} : vector<16x32xf32> to vector<8x8xf32>
    %255 = vector.extract_strided_slice %252 {offsets = [0, 16], sizes = [8, 8], strides = [1, 1]} : vector<16x32xf32> to vector<8x8xf32>
    %256 = vector.extract_strided_slice %252 {offsets = [0, 24], sizes = [8, 8], strides = [1, 1]} : vector<16x32xf32> to vector<8x8xf32>
    %257 = vector.extract_strided_slice %252 {offsets = [8, 0], sizes = [8, 8], strides = [1, 1]} : vector<16x32xf32> to vector<8x8xf32>
    %258 = vector.extract_strided_slice %252 {offsets = [8, 8], sizes = [8, 8], strides = [1, 1]} : vector<16x32xf32> to vector<8x8xf32>
    %259 = vector.extract_strided_slice %252 {offsets = [8, 16], sizes = [8, 8], strides = [1, 1]} : vector<16x32xf32> to vector<8x8xf32>
    %260 = vector.extract_strided_slice %252 {offsets = [8, 24], sizes = [8, 8], strides = [1, 1]} : vector<16x32xf32> to vector<8x8xf32>
    %261 = vector.shape_cast %253 : vector<8x8xf32> to vector<1x8x8xf32>
    %262 = vector.shape_cast %254 : vector<8x8xf32> to vector<1x8x8xf32>
    %263 = vector.shape_cast %255 : vector<8x8xf32> to vector<1x8x8xf32>
    %264 = vector.shape_cast %256 : vector<8x8xf32> to vector<1x8x8xf32>
    %265 = vector.shape_cast %257 : vector<8x8xf32> to vector<1x8x8xf32>
    %266 = vector.shape_cast %258 : vector<8x8xf32> to vector<1x8x8xf32>
    %267 = vector.shape_cast %259 : vector<8x8xf32> to vector<1x8x8xf32>
    %268 = vector.shape_cast %260 : vector<8x8xf32> to vector<1x8x8xf32>
    %269 = tpu.concatenate %261, %262, %263, %264, %265, %266, %267, %268 in 0 : vector<1x8x8xf32>, vector<1x8x8xf32>, vector<1x8x8xf32>, vector<1x8x8xf32>, vector<1x8x8xf32>, vector<1x8x8xf32>, vector<1x8x8xf32>, vector<1x8x8xf32> -> vector<8x8x8xf32>
    %270 = vector.extract_strided_slice %251 {offsets = [0, 32], sizes = [16, 32], strides = [1, 1]} : vector<16x96xf32> to vector<16x32xf32>
    %271 = vector.extract_strided_slice %270 {offsets = [0, 0], sizes = [8, 8], strides = [1, 1]} : vector<16x32xf32> to vector<8x8xf32>
    %272 = vector.extract_strided_slice %270 {offsets = [0, 8], sizes = [8, 8], strides = [1, 1]} : vector<16x32xf32> to vector<8x8xf32>
    %273 = vector.extract_strided_slice %270 {offsets = [0, 16], sizes = [8, 8], strides = [1, 1]} : vector<16x32xf32> to vector<8x8xf32>
    %274 = vector.extract_strided_slice %270 {offsets = [0, 24], sizes = [8, 8], strides = [1, 1]} : vector<16x32xf32> to vector<8x8xf32>
    %275 = vector.extract_strided_slice %270 {offsets = [8, 0], sizes = [8, 8], strides = [1, 1]} : vector<16x32xf32> to vector<8x8xf32>
    %276 = vector.extract_strided_slice %270 {offsets = [8, 8], sizes = [8, 8], strides = [1, 1]} : vector<16x32xf32> to vector<8x8xf32>
    %277 = vector.extract_strided_slice %270 {offsets = [8, 16], sizes = [8, 8], strides = [1, 1]} : vector<16x32xf32> to vector<8x8xf32>
    %278 = vector.extract_strided_slice %270 {offsets = [8, 24], sizes = [8, 8], strides = [1, 1]} : vector<16x32xf32> to vector<8x8xf32>
    %279 = vector.shape_cast %271 : vector<8x8xf32> to vector<1x8x8xf32>
    %280 = vector.shape_cast %272 : vector<8x8xf32> to vector<1x8x8xf32>
    %281 = vector.shape_cast %273 : vector<8x8xf32> to vector<1x8x8xf32>
    %282 = vector.shape_cast %274 : vector<8x8xf32> to vector<1x8x8xf32>
    %283 = vector.shape_cast %275 : vector<8x8xf32> to vector<1x8x8xf32>
    %284 = vector.shape_cast %276 : vector<8x8xf32> to vector<1x8x8xf32>
    %285 = vector.shape_cast %277 : vector<8x8xf32> to vector<1x8x8xf32>
    %286 = vector.shape_cast %278 : vector<8x8xf32> to vector<1x8x8xf32>
    %287 = tpu.concatenate %279, %280, %281, %282, %283, %284, %285, %286 in 0 : vector<1x8x8xf32>, vector<1x8x8xf32>, vector<1x8x8xf32>, vector<1x8x8xf32>, vector<1x8x8xf32>, vector<1x8x8xf32>, vector<1x8x8xf32>, vector<1x8x8xf32> -> vector<8x8x8xf32>
    %288 = vector.extract_strided_slice %251 {offsets = [0, 64], sizes = [16, 32], strides = [1, 1]} : vector<16x96xf32> to vector<16x32xf32>
    %289 = vector.extract_strided_slice %288 {offsets = [0, 0], sizes = [8, 8], strides = [1, 1]} : vector<16x32xf32> to vector<8x8xf32>
    %290 = vector.extract_strided_slice %288 {offsets = [0, 8], sizes = [8, 8], strides = [1, 1]} : vector<16x32xf32> to vector<8x8xf32>
    %291 = vector.extract_strided_slice %288 {offsets = [0, 16], sizes = [8, 8], strides = [1, 1]} : vector<16x32xf32> to vector<8x8xf32>
    %292 = vector.extract_strided_slice %288 {offsets = [0, 24], sizes = [8, 8], strides = [1, 1]} : vector<16x32xf32> to vector<8x8xf32>
    %293 = vector.extract_strided_slice %288 {offsets = [8, 0], sizes = [8, 8], strides = [1, 1]} : vector<16x32xf32> to vector<8x8xf32>
    %294 = vector.extract_strided_slice %288 {offsets = [8, 8], sizes = [8, 8], strides = [1, 1]} : vector<16x32xf32> to vector<8x8xf32>
    %295 = vector.extract_strided_slice %288 {offsets = [8, 16], sizes = [8, 8], strides = [1, 1]} : vector<16x32xf32> to vector<8x8xf32>
    %296 = vector.extract_strided_slice %288 {offsets = [8, 24], sizes = [8, 8], strides = [1, 1]} : vector<16x32xf32> to vector<8x8xf32>
    %297 = vector.shape_cast %289 : vector<8x8xf32> to vector<1x8x8xf32>
    %298 = vector.shape_cast %290 : vector<8x8xf32> to vector<1x8x8xf32>
    %299 = vector.shape_cast %291 : vector<8x8xf32> to vector<1x8x8xf32>
    %300 = vector.shape_cast %292 : vector<8x8xf32> to vector<1x8x8xf32>
    %301 = vector.shape_cast %293 : vector<8x8xf32> to vector<1x8x8xf32>
    %302 = vector.shape_cast %294 : vector<8x8xf32> to vector<1x8x8xf32>
    %303 = vector.shape_cast %295 : vector<8x8xf32> to vector<1x8x8xf32>
    %304 = vector.shape_cast %296 : vector<8x8xf32> to vector<1x8x8xf32>
    %305 = tpu.concatenate %297, %298, %299, %300, %301, %302, %303, %304 in 0 : vector<1x8x8xf32>, vector<1x8x8xf32>, vector<1x8x8xf32>, vector<1x8x8xf32>, vector<1x8x8xf32>, vector<1x8x8xf32>, vector<1x8x8xf32>, vector<1x8x8xf32> -> vector<8x8x8xf32>
    "tpu.trace_start"() <{level = 10 : i32, message = "hqd,hkd->hqk"}> : () -> ()
    %cst_88 = arith.constant dense<0.000000e+00> : vector<8x8x8xf32>
    %306 = tpu.matmul %269, %287, %cst_88 {dimension_numbers = #tpu.dot_dimension_numbers<[2], [2], [1], [1], [0, 0, 0, 1, 1, 1], [0], [0]>} : vector<8x8x8xf32>, vector<8x8x8xf32>, vector<8x8x8xf32> -> vector<8x8x8xf32>
    "tpu.trace_stop"() : () -> ()
    %cst_89 = arith.constant 0.353553385 : f32
    %307 = vector.broadcast %cst_89 : f32 to vector<8x8x8xf32>
    %308 = arith.mulf %306, %307 : vector<8x8x8xf32>
    %309 = vector.broadcast %34 : vector<8x1x8xf32> to vector<8x8x8xf32>
    %310 = arith.addf %308, %309 : vector<8x8x8xf32>
    %cst_90 = arith.constant dense<0xFF800000> : vector<8x8xf32>
    %311 = vector.multi_reduction <maximumf>, %310, %cst_90 [2] : vector<8x8x8xf32> to vector<8x8xf32>
    %312 = vector.shape_cast %311 : vector<8x8xf32> to vector<8x8x1xf32>
    %313 = vector.broadcast %312 : vector<8x8x1xf32> to vector<8x8x8xf32>
    %314 = arith.subf %310, %313 : vector<8x8x8xf32>
    %315 = math.exp %314 : vector<8x8x8xf32>
    %cst_91 = arith.constant dense<0.000000e+00> : vector<8x8xf32>
    %316 = vector.multi_reduction <add>, %315, %cst_91 [2] : vector<8x8x8xf32> to vector<8x8xf32>
    %317 = vector.shape_cast %316 : vector<8x8xf32> to vector<8x8x1xf32>
    %318 = vector.broadcast %317 : vector<8x8x1xf32> to vector<8x8x8xf32>
    %319 = arith.divf %315, %318 : vector<8x8x8xf32>
    "tpu.trace_start"() <{level = 10 : i32, message = "hqk,hkd->hqd"}> : () -> ()
    %cst_92 = arith.constant dense<0.000000e+00> : vector<8x8x8xf32>
    %320 = tpu.matmul %319, %305, %cst_92 {dimension_numbers = #tpu.dot_dimension_numbers<[2], [1], [1], [2], [0, 0, 0, 1, 1, 2], [0], [0]>} : vector<8x8x8xf32>, vector<8x8x8xf32>, vector<8x8x8xf32> -> vector<8x8x8xf32>
    "tpu.trace_stop"() : () -> ()
    %321 = vector.extract_strided_slice %320 {offsets = [0, 0, 0], sizes = [1, 8, 8], strides = [1, 1, 1]} : vector<8x8x8xf32> to vector<1x8x8xf32>
    %322 = vector.shape_cast %321 : vector<1x8x8xf32> to vector<8x8xf32>
    %323 = vector.extract_strided_slice %320 {offsets = [1, 0, 0], sizes = [1, 8, 8], strides = [1, 1, 1]} : vector<8x8x8xf32> to vector<1x8x8xf32>
    %324 = vector.shape_cast %323 : vector<1x8x8xf32> to vector<8x8xf32>
    %325 = vector.extract_strided_slice %320 {offsets = [2, 0, 0], sizes = [1, 8, 8], strides = [1, 1, 1]} : vector<8x8x8xf32> to vector<1x8x8xf32>
    %326 = vector.shape_cast %325 : vector<1x8x8xf32> to vector<8x8xf32>
    %327 = vector.extract_strided_slice %320 {offsets = [3, 0, 0], sizes = [1, 8, 8], strides = [1, 1, 1]} : vector<8x8x8xf32> to vector<1x8x8xf32>
    %328 = vector.shape_cast %327 : vector<1x8x8xf32> to vector<8x8xf32>
    %329 = tpu.concatenate %322, %324, %326, %328 in 1 : vector<8x8xf32>, vector<8x8xf32>, vector<8x8xf32>, vector<8x8xf32> -> vector<8x32xf32>
    %330 = vector.extract_strided_slice %320 {offsets = [4, 0, 0], sizes = [1, 8, 8], strides = [1, 1, 1]} : vector<8x8x8xf32> to vector<1x8x8xf32>
    %331 = vector.shape_cast %330 : vector<1x8x8xf32> to vector<8x8xf32>
    %332 = vector.extract_strided_slice %320 {offsets = [5, 0, 0], sizes = [1, 8, 8], strides = [1, 1, 1]} : vector<8x8x8xf32> to vector<1x8x8xf32>
    %333 = vector.shape_cast %332 : vector<1x8x8xf32> to vector<8x8xf32>
    %334 = vector.extract_strided_slice %320 {offsets = [6, 0, 0], sizes = [1, 8, 8], strides = [1, 1, 1]} : vector<8x8x8xf32> to vector<1x8x8xf32>
    %335 = vector.shape_cast %334 : vector<1x8x8xf32> to vector<8x8xf32>
    %336 = vector.extract_strided_slice %320 {offsets = [7, 0, 0], sizes = [1, 8, 8], strides = [1, 1, 1]} : vector<8x8x8xf32> to vector<1x8x8xf32>
    %337 = vector.shape_cast %336 : vector<1x8x8xf32> to vector<8x8xf32>
    %338 = tpu.concatenate %331, %333, %335, %337 in 1 : vector<8x8xf32>, vector<8x8xf32>, vector<8x8xf32>, vector<8x8xf32> -> vector<8x32xf32>
    %339 = tpu.concatenate %329, %338 in 0 : vector<8x32xf32>, vector<8x32xf32> -> vector<16x32xf32>
    %c1_93 = arith.constant 1 : index
    %c0_94 = arith.constant 0 : index
    %c0_95 = arith.constant 0 : index
    %340 = vector.load %arg6[%c1_93, %c0_94, %c0_95] : memref<2x32x32xf32, #tpu.memory_space<vmem>>, vector<1x32x32xf32>
    %341 = vector.shape_cast %340 : vector<1x32x32xf32> to vector<32x32xf32>
    %cst_96 = arith.constant dense<0.000000e+00> : vector<16x32xf32>
    %342 = tpu.matmul %339, %341, %cst_96 {dimension_numbers = #tpu.dot_dimension_numbers<[1], [0], [0], [1], [0, 0, 1, 1], [], []>} : vector<16x32xf32>, vector<32x32xf32>, vector<16x32xf32> -> vector<16x32xf32>
    %c1_97 = arith.constant 1 : index
    %c0_98 = arith.constant 0 : index
    %c0_99 = arith.constant 0 : index
    %343 = vector.load %arg7[%c1_97, %c0_98, %c0_99] : memref<2x1x32xf32, #tpu.memory_space<vmem>>, vector<1x1x32xf32>
    %344 = vector.shape_cast %343 : vector<1x1x32xf32> to vector<1x32xf32>
    %345 = vector.broadcast %344 : vector<1x32xf32> to vector<16x32xf32>
    %346 = arith.addf %342, %345 : vector<16x32xf32>
    %347 = arith.addf %346, %244 : vector<16x32xf32>
    %c1_100 = arith.constant 1 : index
    %c0_101 = arith.constant 0 : index
    %c0_102 = arith.constant 0 : index
    %348 = vector.load %arg8[%c1_100, %c0_101, %c0_102] : memref<2x1x32xf32, #tpu.memory_space<vmem>>, vector<1x1x32xf32>
    %349 = vector.shape_cast %348 : vector<1x1x32xf32> to vector<1x32xf32>
    %c1_103 = arith.constant 1 : index
    %c0_104 = arith.constant 0 : index
    %c0_105 = arith.constant 0 : index
    %350 = vector.load %arg9[%c1_103, %c0_104, %c0_105] : memref<2x1x32xf32, #tpu.memory_space<vmem>>, vector<1x1x32xf32>
    %351 = vector.shape_cast %350 : vector<1x1x32xf32> to vector<1x32xf32>
    %cst_106 = arith.constant dense<0.000000e+00> : vector<16xf32>
    %352 = vector.multi_reduction <add>, %347, %cst_106 [1] : vector<16x32xf32> to vector<16xf32>
    %353 = vector.shape_cast %352 : vector<16xf32> to vector<16x1xf32>
    %cst_107 = arith.constant 3.200000e+01 : f32
    %354 = vector.broadcast %cst_107 : f32 to vector<16x1xf32>
    %355 = arith.divf %353, %354 : vector<16x1xf32>
    %356 = vector.broadcast %355 : vector<16x1xf32> to vector<16x32xf32>
    %357 = arith.subf %347, %356 : vector<16x32xf32>
    %358 = arith.mulf %357, %357 : vector<16x32xf32>
    %cst_108 = arith.constant dense<0.000000e+00> : vector<16xf32>
    %359 = vector.multi_reduction <add>, %358, %cst_108 [1] : vector<16x32xf32> to vector<16xf32>
    %360 = vector.shape_cast %359 : vector<16xf32> to vector<16x1xf32>
    %cst_109 = arith.constant 3.200000e+01 : f32
    %361 = vector.broadcast %cst_109 : f32 to vector<16x1xf32>
    %362 = arith.divf %360, %361 : vector<16x1xf32>
    %363 = vector.broadcast %355 : vector<16x1xf32> to vector<16x32xf32>
    %364 = arith.subf %347, %363 : vector<16x32xf32>
    %cst_110 = arith.constant 9.99999996E-13 : f32
    %365 = vector.broadcast %cst_110 : f32 to vector<16x1xf32>
    %366 = arith.addf %362, %365 : vector<16x1xf32>
    %367 = math.rsqrt %366 : vector<16x1xf32>
    %368 = vector.broadcast %367 : vector<16x1xf32> to vector<16x32xf32>
    %369 = arith.mulf %364, %368 : vector<16x32xf32>
    %370 = vector.broadcast %349 : vector<1x32xf32> to vector<16x32xf32>
    %371 = arith.mulf %369, %370 : vector<16x32xf32>
    %372 = vector.broadcast %351 : vector<1x32xf32> to vector<16x32xf32>
    %373 = arith.addf %371, %372 : vector<16x32xf32>
    %c1_111 = arith.constant 1 : index
    %c0_112 = arith.constant 0 : index
    %c0_113 = arith.constant 0 : index
    %374 = vector.load %arg10[%c1_111, %c0_112, %c0_113] : memref<2x32x128xf32, #tpu.memory_space<vmem>>, vector<1x32x128xf32>
    %375 = vector.shape_cast %374 : vector<1x32x128xf32> to vector<32x128xf32>
    %cst_114 = arith.constant dense<0.000000e+00> : vector<16x128xf32>
    %376 = tpu.matmul %373, %375, %cst_114 {dimension_numbers = #tpu.dot_dimension_numbers<[1], [0], [0], [1], [0, 0, 1, 1], [], []>} : vector<16x32xf32>, vector<32x128xf32>, vector<16x128xf32> -> vector<16x128xf32>
    %c1_115 = arith.constant 1 : index
    %c0_116 = arith.constant 0 : index
    %c0_117 = arith.constant 0 : index
    %377 = vector.load %arg11[%c1_115, %c0_116, %c0_117] : memref<2x1x128xf32, #tpu.memory_space<vmem>>, vector<1x1x128xf32>
    %378 = vector.shape_cast %377 : vector<1x1x128xf32> to vector<1x128xf32>
    %379 = vector.broadcast %378 : vector<1x128xf32> to vector<16x128xf32>
    %380 = arith.addf %376, %379 : vector<16x128xf32>
    %cst_118 = arith.constant 5.000000e-01 : f32
    %381 = vector.broadcast %cst_118 : f32 to vector<16x128xf32>
    %382 = arith.mulf %381, %380 : vector<16x128xf32>
    %cst_119 = arith.constant 0.707106769 : f32
    %383 = vector.broadcast %cst_119 : f32 to vector<16x128xf32>
    %384 = arith.mulf %380, %383 : vector<16x128xf32>
    %385 = math.absf %384 : vector<16x128xf32>
    %cst_120 = arith.constant 0.327591091 : f32
    %386 = vector.broadcast %cst_120 : f32 to vector<16x128xf32>
    %387 = arith.mulf %386, %385 : vector<16x128xf32>
    %cst_121 = arith.constant 1.000000e+00 : f32
    %388 = vector.broadcast %cst_121 : f32 to vector<16x128xf32>
    %389 = arith.addf %388, %387 : vector<16x128xf32>
    %cst_122 = arith.constant 1.000000e+00 : f32
    %390 = vector.broadcast %cst_122 : f32 to vector<16x128xf32>
    %391 = arith.divf %390, %389 : vector<16x128xf32>
    %cst_123 = arith.constant 1.06140542 : f32
    %392 = vector.broadcast %cst_123 : f32 to vector<16x128xf32>
    %393 = arith.mulf %391, %392 : vector<16x128xf32>
    %cst_124 = arith.constant -1.45315206 : f32
    %394 = vector.broadcast %cst_124 : f32 to vector<16x128xf32>
    %395 = arith.addf %394, %393 : vector<16x128xf32>
    %396 = arith.mulf %391, %395 : vector<16x128xf32>
    %cst_125 = arith.constant 1.42141378 : f32
    %397 = vector.broadcast %cst_125 : f32 to vector<16x128xf32>
    %398 = arith.addf %397, %396 : vector<16x128xf32>
    %399 = arith.mulf %391, %398 : vector<16x128xf32>
    %cst_126 = arith.constant -0.284496725 : f32
    %400 = vector.broadcast %cst_126 : f32 to vector<16x128xf32>
    %401 = arith.addf %400, %399 : vector<16x128xf32>
    %402 = arith.mulf %391, %401 : vector<16x128xf32>
    %cst_127 = arith.constant 0.254829586 : f32
    %403 = vector.broadcast %cst_127 : f32 to vector<16x128xf32>
    %404 = arith.addf %403, %402 : vector<16x128xf32>
    %405 = arith.mulf %391, %404 : vector<16x128xf32>
    %cst_128 = arith.constant 0.000000e+00 : f32
    %406 = vector.broadcast %cst_128 : f32 to vector<16x128xf32>
    %407 = arith.subf %406, %385 : vector<16x128xf32>
    %408 = arith.mulf %407, %385 : vector<16x128xf32>
    %409 = math.exp %408 : vector<16x128xf32>
    %410 = arith.mulf %405, %409 : vector<16x128xf32>
    %cst_129 = arith.constant 1.000000e+00 : f32
    %411 = vector.broadcast %cst_129 : f32 to vector<16x128xf32>
    %412 = arith.subf %411, %410 : vector<16x128xf32>
    %cst_130 = arith.constant 0.000000e+00 : f32
    %413 = vector.broadcast %cst_130 : f32 to vector<16x128xf32>
    %414 = arith.cmpf oge, %384, %413 : vector<16x128xf32>
    %cst_131 = arith.constant 0.000000e+00 : f32
    %415 = vector.broadcast %cst_131 : f32 to vector<16x128xf32>
    %416 = arith.subf %415, %412 : vector<16x128xf32>
    %417 = arith.select %414, %412, %416 : vector<16x128xi1>, vector<16x128xf32>
    %cst_132 = arith.constant 1.000000e+00 : f32
    %418 = vector.broadcast %cst_132 : f32 to vector<16x128xf32>
    %419 = arith.addf %418, %417 : vector<16x128xf32>
    %420 = arith.mulf %382, %419 : vector<16x128xf32>
    %c1_133 = arith.constant 1 : index
    %c0_134 = arith.constant 0 : index
    %c0_135 = arith.constant 0 : index
    %421 = vector.load %arg12[%c1_133, %c0_134, %c0_135] : memref<2x128x32xf32, #tpu.memory_space<vmem>>, vector<1x128x32xf32>
    %422 = vector.shape_cast %421 : vector<1x128x32xf32> to vector<128x32xf32>
    %cst_136 = arith.constant dense<0.000000e+00> : vector<16x32xf32>
    %423 = tpu.matmul %420, %422, %cst_136 {dimension_numbers = #tpu.dot_dimension_numbers<[1], [0], [0], [1], [0, 0, 1, 1], [], []>} : vector<16x128xf32>, vector<128x32xf32>, vector<16x32xf32> -> vector<16x32xf32>
    %c1_137 = arith.constant 1 : index
    %c0_138 = arith.constant 0 : index
    %c0_139 = arith.constant 0 : index
    %424 = vector.load %arg13[%c1_137, %c0_138, %c0_139] : memref<2x1x32xf32, #tpu.memory_space<vmem>>, vector<1x1x32xf32>
    %425 = vector.shape_cast %424 : vector<1x1x32xf32> to vector<1x32xf32>
    %426 = vector.broadcast %425 : vector<1x32xf32> to vector<16x32xf32>
    %427 = arith.addf %423, %426 : vector<16x32xf32>
    %428 = arith.addf %427, %373 : vector<16x32xf32>
    %c1_140 = arith.constant 1 : index
    %c0_141 = arith.constant 0 : index
    %c0_142 = arith.constant 0 : index
    %429 = vector.load %arg14[%c1_140, %c0_141, %c0_142] : memref<2x1x32xf32, #tpu.memory_space<vmem>>, vector<1x1x32xf32>
    %430 = vector.shape_cast %429 : vector<1x1x32xf32> to vector<1x32xf32>
    %c1_143 = arith.constant 1 : index
    %c0_144 = arith.constant 0 : index
    %c0_145 = arith.constant 0 : index
    %431 = vector.load %arg15[%c1_143, %c0_144, %c0_145] : memref<2x1x32xf32, #tpu.memory_space<vmem>>, vector<1x1x32xf32>
    %432 = vector.shape_cast %431 : vector<1x1x32xf32> to vector<1x32xf32>
    %cst_146 = arith.constant dense<0.000000e+00> : vector<16xf32>
    %433 = vector.multi_reduction <add>, %428, %cst_146 [1] : vector<16x32xf32> to vector<16xf32>
    %434 = vector.shape_cast %433 : vector<16xf32> to vector<16x1xf32>
    %cst_147 = arith.constant 3.200000e+01 : f32
    %435 = vector.broadcast %cst_147 : f32 to vector<16x1xf32>
    %436 = arith.divf %434, %435 : vector<16x1xf32>
    %437 = vector.broadcast %436 : vector<16x1xf32> to vector<16x32xf32>
    %438 = arith.subf %428, %437 : vector<16x32xf32>
    %439 = arith.mulf %438, %438 : vector<16x32xf32>
    %cst_148 = arith.constant dense<0.000000e+00> : vector<16xf32>
    %440 = vector.multi_reduction <add>, %439, %cst_148 [1] : vector<16x32xf32> to vector<16xf32>
    %441 = vector.shape_cast %440 : vector<16xf32> to vector<16x1xf32>
    %cst_149 = arith.constant 3.200000e+01 : f32
    %442 = vector.broadcast %cst_149 : f32 to vector<16x1xf32>
    %443 = arith.divf %441, %442 : vector<16x1xf32>
    %444 = vector.broadcast %436 : vector<16x1xf32> to vector<16x32xf32>
    %445 = arith.subf %428, %444 : vector<16x32xf32>
    %cst_150 = arith.constant 9.99999996E-13 : f32
    %446 = vector.broadcast %cst_150 : f32 to vector<16x1xf32>
    %447 = arith.addf %443, %446 : vector<16x1xf32>
    %448 = math.rsqrt %447 : vector<16x1xf32>
    %449 = vector.broadcast %448 : vector<16x1xf32> to vector<16x32xf32>
    %450 = arith.mulf %445, %449 : vector<16x32xf32>
    %451 = vector.broadcast %430 : vector<1x32xf32> to vector<16x32xf32>
    %452 = arith.mulf %450, %451 : vector<16x32xf32>
    %453 = vector.broadcast %432 : vector<1x32xf32> to vector<16x32xf32>
    %454 = arith.addf %452, %453 : vector<16x32xf32>
    %455 = vector.extract_strided_slice %454 {offsets = [0, 0], sizes = [1, 32], strides = [1, 1]} : vector<16x32xf32> to vector<1x32xf32>
    %456 = vector.extract_strided_slice %454 {offsets = [8, 0], sizes = [1, 32], strides = [1, 1]} : vector<16x32xf32> to vector<1x32xf32>
    %457 = tpu.concatenate %455, %456 in 0 : vector<1x32xf32>, vector<1x32xf32> -> vector<2x32xf32>
    %c0_151 = arith.constant 0 : index
    %c0_152 = arith.constant 0 : index
    %458 = vector.load %arg16[%c0_151, %c0_152] : memref<32x128xf32, #tpu.memory_space<vmem>>, vector<32x128xf32>
    %cst_153 = arith.constant dense<0.000000e+00> : vector<2x128xf32>
    %459 = tpu.matmul %457, %458, %cst_153 {dimension_numbers = #tpu.dot_dimension_numbers<[1], [0], [0], [1], [0, 0, 1, 1], [], []>} : vector<2x32xf32>, vector<32x128xf32>, vector<2x128xf32> -> vector<2x128xf32>
    %c0_154 = arith.constant 0 : index
    %c0_155 = arith.constant 0 : index
    %460 = vector.load %arg17[%c0_154, %c0_155] : memref<1x128xf32, #tpu.memory_space<vmem>>, vector<1x128xf32>
    %461 = vector.broadcast %460 : vector<1x128xf32> to vector<2x128xf32>
    %462 = arith.addf %459, %461 : vector<2x128xf32>
    %c0_156 = arith.constant 0 : index
    %c0_157 = arith.constant 0 : index
    %463 = vector.load %arg18[%c0_156, %c0_157] : memref<2x128xf32, #tpu.memory_space<vmem>>, vector<2x128xf32>
    tpu.vector_store %arg18[%c0_156, %c0_157], %462 {strides = array<i32>} : memref<2x128xf32, #tpu.memory_space<vmem>>, vector<2x128xf32>,
    return
  }
}

</mosaic_0001>

<bundles_post_ra>
// kernel: bert_classifier.1
= control target key start
LH: loop header
LB: loop body
LE: loop exit
PB: predicated region body
PF: predicated region fallthrough
CT: control target
= control target key end

     0   :  { %s5517_s0 = inlined_call_operand.vmem [shape: f32[16,32], index: 0, kind: input, shape index: {}]   ;;  %s5518_s1 = inlined_call_operand.vmem [shape: f32[2,1,8], index: 1, kind: input, shape index: {}]   ;;  %s5519_s2 = inlined_call_operand.vmem [shape: f32[1,32], index: 2, kind: input, shape index: {}]   ;;  %s5520_s3 = inlined_call_operand.vmem [shape: f32[1,32], index: 3, kind: input, shape index: {}]   ;;  %s5521_s4 = inlined_call_operand.vmem [shape: f32[2,32,96], index: 4, kind: input, shape index: {}]   ;;  %s5522_s5 = inlined_call_operand.vmem [shape: f32[2,1,96], index: 5, kind: input, shape index: {}]   ;;  %s5523_s6 = inlined_call_operand.vmem [shape: f32[2,32,32], index: 6, kind: input, shape index: {}]   ;;  %s5524_s7 = inlined_call_operand.vmem [shape: f32[2,1,32], index: 7, kind: input, shape index: {}]   ;;  %s5525_s8 = inlined_call_operand.vmem [shape: f32[2,1,32], index: 8, kind: input, shape index: {}]   ;;  %s5526_s9 = inlined_call_operand.vmem [shape: f32[2,1,32], index: 9, kind: input, shape index: {}]   ;;  %s5527_s10 = inlined_call_operand.vmem [shape: f32[2,32,128], index: 10, kind: input, shape index: {}]   ;;  %s5528_s11 = inlined_call_operand.vmem [shape: f32[2,1,128], index: 11, kind: input, shape index: {}]   ;;  %s5529_s12 = inlined_call_operand.vmem [shape: f32[2,128,32], index: 12, kind: input, shape index: {}]   ;;  %s5530_s13 = inlined_call_operand.vmem [shape: f32[2,1,32], index: 13, kind: input, shape index: {}]   ;;  %s5531_s14 = inlined_call_operand.vmem [shape: f32[2,1,32], index: 14, kind: input, shape index: {}]   ;;  %s5532_s15 = inlined_call_operand.vmem [shape: f32[2,1,32], index: 15, kind: input, shape index: {}]   ;;  %s5533_s16 = inlined_call_operand.vmem [shape: f32[32,128], index: 16, kind: input, shape index: {}]   ;;  %s5534_s17 = inlined_call_operand.vmem [shape: f32[1,128], index: 17, kind: input, shape index: {}]   ;;  %s5535_s18 = inlined_call_operand.hbm [shape: f32[2,128], index: 18, kind: output, shape index: {}]  }
   0x1   :  { %5540 = sst [smem:[#allocation5_spill]] %s5517_s0 }
   0x2   :  { %5541 = sst [smem:[#allocation6_spill]] %s5518_s1 }
   0x3   :  { %5542 = sst [smem:[#allocation7_spill]] %s5519_s2 }
   0x4   :  { %s5543_s29 = sld [smem:[#allocation5_spill]]  ;;  %vm64_vm0 = vcmask 261120  }
   0xa   :  { %v60_v0 = vld [vmem:[%s5543_s29] sm:$0xff]  ;;  %v61_v1 = vld [vmem:[%s5543_s29 + $0x8] sm:$0xff] }
   0xb   :  { %23 = vsyncpa [#allocation3], 0  ;;  %v65_v2 = vsel %vm64_vm0, %v60_v0, 0.0  ;;  %v68_v3 = vsel %vm64_vm0, %v61_v1, 0.0  ;;  %v113_v14 = vld [vmem:[%s5521_s4 + $0x18] sm:$0xff]  ;;  %v112_v15 = vld [vmem:[%s5521_s4 + $0x10] sm:$0xff] }
   0xc   :  { %66 = vadd.xlane.f32.xlu0 %v65_v2  ;;  %4268 = vmatprep.subr.mxu1 %v113_v14  ;;  %v111_v16 = vld [vmem:[%s5521_s4 + $0x8] sm:$0xff]  ;;  %v110_v17 = vld [vmem:[%s5521_s4] sm:$0xff]  ;;  %s5544_s27 = sld [smem:[#allocation7_spill]]  ;;  %v4710_v34 = vmov 0.0   ;;  %vm4711_vm1 = vmmov 0   ;;  %s4712_s0 = smov 112  }
   0xd   :  { %4269 = vmatpush3.msra.mxu1 %v113_v14  ;;  %v4010_v27 = vld [vmem:[%s5520_s3] ss:$0 sm:$0xff]  ;;  %4299 = vmatprep.subr.mxu0 %v4710_v34  ;;  %s4713_s19 = smov 120   ;;  %s4714_s1 = smov 104   ;;  %vm218_vm2 = vcmask 64512   ;;  %vm1562_vm3 = vcmask 130048  }
   0xe   :  { %4270 = vmatprep.subr.mxu1 %v112_v15  ;;  %v4011_v36 = vld [vmem:[%s5522_s5] ss:$0 sm:$0xff]  ;;  %4301 = vmatprep.mubr.msk.f32.mxu0 %vm4711_vm1, %v4710_v34  ;;  %s4715_s20 = smov 96   ;;  %s5545_s2 = sld [smem:[#allocation6_spill]]  ;;  %vm1564_vm4 = vcmask 195584   ;;  %vm3908_vm9 = vcmask 1040384  }
   0xf   :  { %4271 = vmatpush3.msra.mxu1 %v112_v15  ;;  %s4716_s25 = smov 64   ;;  %s4717_s26 = smov 8  }
  0x10   :  { %69 = vadd.xlane.f32.xlu0 %v68_v3  ;;  %4272 = vmatprep.subr.mxu1 %v111_v16  ;;  %s5538_s28 = smov 24  }
  0x11   :  { %4273 = vmatpush3.msra.mxu1 %v111_v16 }
  0x12   :  { %4274 = vmatprep.subr.mxu1 %v110_v17  ;;  %v4009_v25 = vld [vmem:[%s5544_s27] ss:$0 sm:$0xff]  ;;  %s4718_s27 = smov 16  }
  0x13   :  { %4275 = vmatpush3.msra.mxu1 %v110_v17 }
  0x14   :  { %4279 = vmatprep.subr.mxu1 %v4710_v34  ;;  %v4030_v55 = vld [vmem:[%s5545_s2] ss:$0 sm:$0xff]  ;;  %v4031_v14 = vld [vmem:[%s5545_s2 + $0x1] ss:$0 sm:$0xff] }
  0x95   :  { %v67_v4 = vpop.xlane.xlu0 %66 }
  0x96   :  { %v72_v5 = vmul.f32 0.03125, %v67_v4 }
  0x98   :  { %v74_v6 = vsub.f32 %v60_v0, %v72_v5 }
  0x99   :  { %v70_v7 = vpop.xlane.xlu0 %69 }
  0x9a   :  { %v73_v8 = vmul.f32 0.03125, %v70_v7  ;;  %v76_v9 = vmul.f32 %v74_v6, %v74_v6 }
  0x9c   :  { %v75_v10 = vsub.f32 %v61_v1, %v73_v8  ;;  %v78_v11 = vsel %vm64_vm0, %v76_v9, 0.0 }
  0x9d   :  { %79 = vadd.xlane.f32.xlu1 %v78_v11 }
  0x9e   :  { %v77_v12 = vmul.f32 %v75_v10, %v75_v10 }
  0xa0   :  { %v81_v13 = vsel %vm64_vm0, %v77_v12, 0.0 }
  0xa1   :  { %82 = vadd.xlane.f32.xlu1 %v81_v13 }
 0x126   :  { %v80_v18 = vpop.xlane.xlu1 %79 }
 0x127   :  { %v84_v19 = vmul.f32 0.03125, %v80_v18 }
 0x129   :  { %v86_v20 = vadd.f32 1e-12, %v84_v19 }
 0x12a   :  { %v83_v21 = vpop.xlane.xlu1 %82 }
 0x12b   :  { %4586 = vrsqrt.f32 %v86_v20  ;;  %v85_v22 = vmul.f32 0.03125, %v83_v21 }
 0x12d   :  { %v87_v23 = vadd.f32 1e-12, %v85_v22 }
 0x12f   :  { %4588 = vrsqrt.f32 %v87_v23 }
 0x138   :  { %v4587_v24 = vpop.eup %4586 }
 0x139   :  { %v90_v26 = vmul.f32 %v4587_v24, %v74_v6 }
 0x13b   :  { %v98_v28 = vmul.f32 %v4009_v25, %v90_v26 }
 0x13c   :  { %v4589_v29 = vpop.eup %4588 }
 0x13d   :  { %v91_v30 = vmul.f32 %v4589_v29, %v75_v10  ;;  %v4844_v31 = vadd.f32 %v4010_v27, %v98_v28 }
 0x13f   :  { %v99_v32 = vmul.f32 %v4009_v25, %v91_v30  ;;  %4276 = vmatprep.mubr.msk.f32.mxu1 %vm64_vm0, %v4844_v31 }
 0x141   :  { %v4848_v33 = vadd.f32 %v4010_v27, %v99_v32 }
 0x143   :  { %4277 = vmatmul.mubr.msk.f32.vlgmr.msra.gmra.mxu1 %vm64_vm0, %v4848_v33 }
 0x144   :  { %4281 = vmatprep.mubr.msk.f32.mxu1 %vm4711_vm1, %v4710_v34 }
 0x203   :  { %v4278_v35 = vpop.f32.mrf.mxu1 }
 0x204   :  { %v4867_v39 = vadd.f32 %v4278_v35, %v4011_v36 }
 0x205   :  { %v193_v37 = vpop.f32.mrf.mxu1 }
 0x206   :  { %v4861_v38 = vadd.f32 %v4011_v36, %v193_v37 }
 0x208   :  { %205 = vrot.lane.b32.xlu1 %v4861_v38, %s4712_s0  ;;  %203 = vrot.lane.b32.xlu0 %v4861_v38, %s4713_s19 }
 0x20c   :  { %207 = vrot.lane.b32.xlu1 %v4861_v38, %s4714_s1  ;;  %212 = vrot.lane.b32.xlu0 %v4867_v39, %s4712_s0 }
 0x210   :  { %210 = vrot.lane.b32.xlu1 %v4867_v39, %s4713_s19  ;;  %216 = vrot.lane.b32.xlu0 %v4861_v38, %s4715_s20 }
 0x214   :  { %214 = vrot.lane.b32.xlu1 %v4867_v39, %s4714_s1 }
 0x27a   :  { %v4879_v40 = vpop.permute.xlu1 %205  ;;  %v4881_v41 = vpop.permute.xlu0 %203 }
 0x27b   :  { %369 = vrot.lane.b32.xlu0 %v4879_v40, %s4715_s20  ;;  %293 = vrot.lane.b32.xlu1 %v4881_v41, %s4715_s20 }
 0x27e   :  { %v4887_v42 = vpop.permute.xlu1 %207  ;;  %v4889_v43 = vpop.permute.xlu0 %212 }
 0x27f   :  { %521 = vrot.lane.b32.xlu0 %v4867_v39, %s4715_s20  ;;  %445 = vrot.lane.b32.xlu1 %v4887_v42, %s4715_s20 }
 0x282   :  { %v4895_v44 = vpop.permute.xlu1 %210  ;;  %v217_v45 = vpop.permute.xlu0 %216 }
 0x283   :  { %597 = vrot.lane.b32.xlu1 %v4895_v44, %s4715_s20  ;;  %673 = vrot.lane.b32.xlu0 %v4889_v43, %s4715_s20 }
 0x284   :  { %4280 = vmatpush3.xpose.msk.msra.mxu1 %vm218_vm2, %v217_v45 }
 0x285   :  { %4284 = vmatprep.subr.mxu1 %v4710_v34 }
 0x286   :  { %v4903_v46 = vpop.permute.xlu1 %214 }
 0x287   :  { %4282 = vmatmul.mubr.msk.f32.vlgmr.msra.gmra.mxu1 %vm218_vm2, %v4861_v38  ;;  %749 = vrot.lane.b32.xlu1 %v4903_v46, %s4715_s20 }
 0x288   :  { %4286 = vmatprep.mubr.msk.f32.mxu1 %vm4711_vm1, %v4710_v34 }
 0x2ed   :  { %v294_v47 = vpop.permute.xlu1 %293  ;;  %v370_v48 = vpop.permute.xlu0 %369 }
 0x2ee   :  { %4285 = vmatpush3.xpose.msk.msra.mxu1 %vm218_vm2, %v294_v47 }
 0x2ef   :  { %4289 = vmatprep.subr.mxu1 %v4710_v34 }
 0x2f1   :  { %v446_v49 = vpop.permute.xlu1 %445  ;;  %4287 = vmatmul.mubr.msk.f32.vlgmr.msra.gmra.mxu1 %vm218_vm2, %v4881_v41  ;;  %v522_v50 = vpop.permute.xlu0 %521 }
 0x2f2   :  { %4290 = vmatpush3.xpose.msk.msra.mxu1 %vm218_vm2, %v370_v48  ;;  %4300 = vmatpush3.xpose.msk.msra.mxu0 %vm218_vm2, %v522_v50 }
 0x2f3   :  { %4291 = vmatprep.mubr.msk.f32.mxu1 %vm4711_vm1, %v4710_v34  ;;  %4294 = vmatprep.subr.mxu1 %v4710_v34 }
 0x2f4   :  { %4309 = vmatprep.subr.mxu0 %v4710_v34 }
 0x2f5   :  { %4292 = vmatmul.mubr.msk.f32.vlgmr.msra.gmra.mxu1 %vm218_vm2, %v4879_v40  ;;  %4302 = vmatmul.mubr.msk.f32.vlgmr.msra.gmra.mxu0 %vm218_vm2, %v4867_v39  ;;  %v674_v51 = vpop.permute.xlu0 %673  ;;  %v598_v52 = vpop.permute.xlu1 %597 }
 0x2f6   :  { %4295 = vmatpush3.xpose.msk.msra.mxu1 %vm218_vm2, %v446_v49  ;;  %4310 = vmatpush3.xpose.msk.msra.mxu0 %vm218_vm2, %v674_v51 }
 0x2f7   :  { %4296 = vmatprep.mubr.msk.f32.mxu1 %vm4711_vm1, %v4710_v34  ;;  %4311 = vmatprep.mubr.msk.f32.mxu0 %vm4711_vm1, %v4710_v34 }
 0x2f8   :  { %4304 = vmatprep.subr.mxu1 %v4710_v34  ;;  %4319 = vmatprep.subr.mxu0 %v4710_v34 }
 0x2f9   :  { %4297 = vmatmul.mubr.msk.f32.vlgmr.msra.gmra.mxu1 %vm218_vm2, %v4887_v42  ;;  %4312 = vmatmul.mubr.msk.f32.vlgmr.msra.gmra.mxu0 %vm218_vm2, %v4889_v43  ;;  %v750_v53 = vpop.permute.xlu1 %749 }
 0x2fa   :  { %4305 = vmatpush3.xpose.msk.msra.mxu1 %vm218_vm2, %v598_v52  ;;  %4306 = vmatprep.mubr.msk.f32.mxu1 %vm4711_vm1, %v4710_v34 }
 0x2fb   :  { %4314 = vmatprep.subr.mxu1 %v4710_v34  ;;  %4321 = vmatprep.mubr.msk.f32.mxu0 %vm4711_vm1, %v4710_v34 }
 0x2fd   :  { %4307 = vmatmul.mubr.msk.f32.vlgmr.msra.gmra.mxu1 %vm218_vm2, %v4895_v44 }
 0x2fe   :  { %4315 = vmatpush3.xpose.msk.msra.mxu1 %vm218_vm2, %v750_v53  ;;  %4316 = vmatprep.mubr.msk.f32.mxu1 %vm4711_vm1, %v4710_v34 }
 0x2ff   :  { %4324 = vmatprep.subr.mxu1 %v4710_v34 }
 0x301   :  { %4317 = vmatmul.mubr.msk.f32.vlgmr.msra.gmra.mxu1 %vm218_vm2, %v4903_v46 }
 0x302   :  { %4326 = vmatprep.mubr.msk.f32.mxu1 %vm4711_vm1, %v4710_v34 }
 0x347   :  { %v289_v54 = vpop.f32.mrf.mxu1 }
 0x348   :  { %v825_v56 = vmul.f32 0.35355338, %v289_v54 }
 0x349   :  { %v4283_v57 = vpop.f32.mrf.mxu1 }
 0x34a   :  { %v4956_v58 = vadd.f32 %v4030_v55, %v825_v56 }
 0x34c   :  { %v853_v59 = vsel %vm218_vm2, %v4956_v58, -inf }
 0x34d   :  { %854 = vmax.xlane.f32.xlu0 %v853_v59 }
 0x3b1   :  { %v365_v60 = vpop.f32.mrf.mxu1 }
 0x3b2   :  { %v826_v61 = vmul.f32 0.35355338, %v365_v60 }
 0x3b3   :  { %v4288_v62 = vpop.f32.mrf.mxu1 }
 0x3b4   :  { %v846_v63 = vadd.f32 %v4030_v55, %v826_v61 }
 0x3b5   :  { %v441_v0 = vpop.f32.mrf.mxu1  ;;  %v593_v1 = vpop.f32.mrf.mxu0 }
 0x3b6   :  { %v827_v2 = vmul.f32 0.35355338, %v441_v0  ;;  %v856_v3 = vsel %vm218_vm2, %v846_v63, -inf  ;;  %v829_v9 = vmul.f32 0.35355338, %v593_v1 }
 0x3b7   :  { %857 = vmax.xlane.f32.xlu1 %v856_v3  ;;  %v4293_v4 = vpop.f32.mrf.mxu1  ;;  %v4303_v5 = vpop.f32.mrf.mxu0 }
 0x3b8   :  { %v4961_v6 = vadd.f32 %v4030_v55, %v827_v2  ;;  %v849_v19 = vadd.f32 %v4031_v14, %v829_v9 }
 0x3b9   :  { %v517_v7 = vpop.f32.mrf.mxu1  ;;  %v745_v8 = vpop.f32.mrf.mxu0 }
 0x3ba   :  { %v828_v10 = vmul.f32 0.35355338, %v517_v7  ;;  %v859_v11 = vsel %vm218_vm2, %v4961_v6, -inf  ;;  %v831_v17 = vmul.f32 0.35355338, %v745_v8  ;;  %v865_v22 = vsel %vm218_vm2, %v849_v19, -inf }
 0x3bb   :  { %860 = vmax.xlane.f32.xlu0 %v859_v11  ;;  %v4298_v12 = vpop.f32.mrf.mxu1  ;;  %v4313_v13 = vpop.f32.mrf.mxu0 }
 0x3bc   :  { %v4968_v15 = vadd.f32 %v4030_v55, %v828_v10  ;;  %v851_v23 = vadd.f32 %v4031_v14, %v831_v17 }
 0x3bd   :  { %v669_v16 = vpop.f32.mrf.mxu1 }
 0x3be   :  { %v862_v18 = vsel %vm218_vm2, %v4968_v15, -inf  ;;  %v871_v25 = vsel %vm218_vm2, %v851_v23, -inf  ;;  %v830_v26 = vmul.f32 0.35355338, %v669_v16 }
 0x3bf   :  { %863 = vmax.xlane.f32.xlu0 %v862_v18  ;;  %v4308_v20 = vpop.f32.mrf.mxu1 }
 0x3c0   :  { %v850_v28 = vadd.f32 %v4031_v14, %v830_v26 }
 0x3c1   :  { %v821_v21 = vpop.f32.mrf.mxu1 }
 0x3c2   :  { %v832_v27 = vmul.f32 0.35355338, %v821_v21  ;;  %v868_v29 = vsel %vm218_vm2, %v850_v28, -inf }
 0x3c3   :  { %v4318_v24 = vpop.f32.mrf.mxu1  ;;  %866 = vmax.xlane.f32.xlu0 %v865_v22 }
 0x3c4   :  { %v852_v30 = vadd.f32 %v4031_v14, %v832_v27 }
 0x3c6   :  { %v874_v32 = vsel %vm218_vm2, %v852_v30, -inf }
 0x3c7   :  { %872 = vmax.xlane.f32.xlu0 %v871_v25 }
 0x3c8   :  { %1017 = vrot.lane.b32.xlu1 %v4881_v41, %s4716_s25 }
 0x3cc   :  { %1093 = vrot.lane.b32.xlu1 %v4879_v40, %s4716_s25 }
 0x3d6   :  { %v855_v35 = vpop.xlane.xlu0 %854 }
 0x3d7   :  { %v877_v47 = vsub.f32 %v4956_v58, %v855_v35 }
 0x3d9   :  { %v885_v50 = vmul.f32 1.442695, %v877_v47 }
 0x3dd   :  { %941 = vrot.lane.b32.xlu0 %v4861_v38, %s4716_s25 }
 0x3f0   :  { %869 = vmax.xlane.f32.xlu1 %v868_v29 }
 0x3f4   :  { %875 = vmax.xlane.f32.xlu1 %v874_v32 }
 0x405   :  { %1169 = vrot.lane.b32.xlu1 %v4887_v42, %s4716_s25 }
 0x440   :  { %v858_v36 = vpop.xlane.xlu1 %857 }
 0x441   :  { %v878_v37 = vsub.f32 %v846_v63, %v858_v36 }
 0x443   :  { %v887_v40 = vmul.f32 1.442695, %v878_v37 }
 0x444   :  { %v1018_v41 = vpop.permute.xlu1 %1017  ;;  %v861_v45 = vpop.xlane.xlu0 %860 }
 0x445   :  { %4590 = vpow2.f32 %v887_v40  ;;  %4325 = vmatpush3.msra.mxu1 %v1018_v41  ;;  %v879_v54 = vsub.f32 %v4961_v6, %v861_v45 }
 0x446   :  { %4334 = vmatprep.subr.mxu1 %v4710_v34 }
 0x447   :  { %v889_v58 = vmul.f32 1.442695, %v879_v54 }
 0x448   :  { %v864_v38 = vpop.xlane.xlu0 %863  ;;  %v1094_v5 = vpop.permute.xlu1 %1093 }
 0x449   :  { %v880_v3 = vsub.f32 %v4968_v15, %v864_v38 }
 0x44b   :  { %v891_v4 = vmul.f32 1.442695, %v880_v3 }
 0x44c   :  { %v867_v48 = vpop.xlane.xlu0 %866 }
 0x44d   :  { %v881_v49 = vsub.f32 %v849_v19, %v867_v48 }
 0x44f   :  { %v893_v51 = vmul.f32 1.442695, %v881_v49 }
 0x450   :  { %v873_v52 = vpop.xlane.xlu0 %872 }
 0x451   :  { %4592 = vpow2.f32 %v893_v51  ;;  %v883_v42 = vsub.f32 %v851_v23, %v873_v52 }
 0x452   :  { %v4591_v53 = vpop.eup %4590  ;;  %4594 = vpow2.f32 %v885_v50 }
 0x453   :  { %v897_v55 = vmul.f32 1.442695, %v883_v42  ;;  %v904_v56 = vsel %vm218_vm2, %v4591_v53, 0.0 }
 0x454   :  { %905 = vadd.xlane.f32.xlu1 %v904_v56  ;;  %v942_v57 = vpop.permute.xlu0 %941 }
 0x455   :  { %4320 = vmatpush3.msra.mxu0 %v942_v57  ;;  %4596 = vpow2.f32 %v897_v55 }
 0x456   :  { %4329 = vmatprep.subr.mxu0 %v4710_v34  ;;  %4598 = vpow2.f32 %v889_v58 }
 0x457   :  { %4600 = vpow2.f32 %v891_v4 }
 0x45e   :  { %v4989_v59 = vpop.eup %4592 }
 0x45f   :  { %v913_v60 = vsel %vm218_vm2, %v4989_v59, 0.0  ;;  %v4595_v61 = vpop.eup %4594 }
 0x460   :  { %914 = vadd.xlane.f32.xlu0 %v913_v60  ;;  %v901_v62 = vsel %vm218_vm2, %v4595_v61, 0.0  ;;  %v1584_v60 = vld [vmem:[%s5523_s6 + $0x18] sm:$0xff] }
 0x462   :  { %v4994_v63 = vpop.eup %4596 }
 0x463   :  { %v919_v0 = vsel %vm218_vm2, %v4994_v63, 0.0  ;;  %v4599_v1 = vpop.eup %4598 }
 0x464   :  { %902 = vadd.xlane.f32.xlu0 %v901_v62  ;;  %v907_v2 = vsel %vm218_vm2, %v4599_v1, 0.0  ;;  %v4601_v11 = vpop.eup %4600  ;;  %v1582_v62 = vld [vmem:[%s5523_s6 + $0x8] sm:$0xff] }
 0x465   :  { %1321 = vrot.lane.b32.xlu1 %v4895_v44, %s4716_s25  ;;  %v910_v12 = vsel %vm218_vm2, %v4601_v11, 0.0 }
 0x468   :  { %920 = vadd.xlane.f32.xlu0 %v919_v0 }
 0x46c   :  { %908 = vadd.xlane.f32.xlu0 %v907_v2 }
 0x479   :  { %v870_v6 = vpop.xlane.xlu1 %869 }
 0x47a   :  { %v882_v7 = vsub.f32 %v850_v28, %v870_v6 }
 0x47c   :  { %v895_v8 = vmul.f32 1.442695, %v882_v7 }
 0x47d   :  { %v876_v9 = vpop.xlane.xlu1 %875 }
 0x47e   :  { %4602 = vpow2.f32 %v895_v8  ;;  %v884_v10 = vsub.f32 %v852_v30, %v876_v9 }
 0x480   :  { %v899_v44 = vmul.f32 1.442695, %v884_v10 }
 0x482   :  { %4604 = vpow2.f32 %v899_v44  ;;  %1245 = vrot.lane.b32.xlu0 %v4867_v39, %s4716_s25  ;;  %v1170_v39 = vpop.permute.xlu1 %1169 }
 0x486   :  { %1397 = vrot.lane.b32.xlu0 %v4889_v43, %s4716_s25 }
 0x489   :  { %911 = vadd.xlane.f32.xlu1 %v910_v12 }
 0x48b   :  { %v4603_v13 = vpop.eup %4602 }
 0x48c   :  { %v916_v14 = vsel %vm218_vm2, %v4603_v13, 0.0 }
 0x48d   :  { %917 = vadd.xlane.f32.xlu1 %v916_v14 }
 0x48f   :  { %v5008_v15 = vpop.eup %4604 }
 0x490   :  { %v922_v16 = vsel %vm218_vm2, %v5008_v15, 0.0 }
 0x491   :  { %923 = vadd.xlane.f32.xlu1 %v922_v16 }
 0x4a2   :  { %1473 = vrot.lane.b32.xlu1 %v4903_v46, %s4716_s25 }
 0x4dd   :  { %v906_v17 = vpop.xlane.xlu1 %905 }
 0x4de   :  { %4606 = vrcp.f32 %v906_v17 }
 0x4e1   :  { %v1322_v35 = vpop.permute.xlu1 %1321 }
 0x4e9   :  { %v915_v43 = vpop.xlane.xlu0 %914 }
 0x4eb   :  { %v4607_v18 = vpop.eup %4606 }
 0x4ec   :  { %v928_v19 = vmul.f32 %v4607_v18, %v4591_v53 }
 0x4ed   :  { %v903_v20 = vpop.xlane.xlu0 %902 }
 0x4ee   :  { %4608 = vrcp.f32 %v903_v20  ;;  %4327 = vmatmul.mubr.msk.f32.vlgmr.msra.gmra.mxu1 %vm218_vm2, %v928_v19 }
 0x4ef   :  { %4335 = vmatpush3.msra.mxu1 %v1170_v39  ;;  %4336 = vmatprep.mubr.msk.f32.mxu1 %vm4711_vm1, %v4710_v34  ;;  %v4040_v39 = vld [vmem:[%s5524_s7] ss:$0 sm:$0xff] }
 0x4f0   :  { %4344 = vmatprep.subr.mxu1 %v4710_v34 }
 0x4f1   :  { %v921_v21 = vpop.xlane.xlu0 %920 }
 0x4f5   :  { %v909_v22 = vpop.xlane.xlu0 %908 }
 0x4f6   :  { %4610 = vrcp.f32 %v909_v22 }
 0x4f7   :  { %4612 = vrcp.f32 %v915_v43 }
 0x4f8   :  { %4614 = vrcp.f32 %v921_v21 }
 0x4f9   :  { %v1246_v25 = vpop.permute.xlu0 %1245 }
 0x4fb   :  { %v4609_v46 = vpop.eup %4608 }
 0x4fc   :  { %v926_v23 = vmul.f32 %v4609_v46, %v4595_v61  ;;  %v1583_v61 = vld [vmem:[%s5523_s6 + $0x10] sm:$0xff] }
 0x4fd   :  { %v1398_v30 = vpop.permute.xlu0 %1397 }
 0x4fe   :  { %4322 = vmatmul.mubr.msk.f32.vlgmr.msra.gmra.mxu0 %vm218_vm2, %v926_v23 }
 0x4ff   :  { %4330 = vmatpush3.msra.mxu0 %v1094_v5  ;;  %4331 = vmatprep.mubr.msk.f32.mxu0 %vm4711_vm1, %v4710_v34 }
 0x500   :  { %4339 = vmatprep.subr.mxu0 %v4710_v34 }
 0x503   :  { %v4611_v24 = vpop.eup %4610 }
 0x504   :  { %v930_v26 = vmul.f32 %v4611_v24, %v4599_v1  ;;  %v4613_v27 = vpop.eup %4612 }
 0x505   :  { %v934_v28 = vmul.f32 %v4613_v27, %v4989_v59  ;;  %v4615_v29 = vpop.eup %4614 }
 0x506   :  { %4332 = vmatmul.mubr.msk.f32.vlgmr.msra.gmra.mxu0 %vm218_vm2, %v930_v26  ;;  %v938_v32 = vmul.f32 %v4615_v29, %v4994_v63  ;;  %v1581_v63 = vld [vmem:[%s5523_s6] sm:$0xff] }
 0x507   :  { %4340 = vmatpush3.msra.mxu0 %v1246_v25  ;;  %4341 = vmatprep.mubr.msk.f32.mxu0 %vm4711_vm1, %v4710_v34 }
 0x508   :  { %4349 = vmatprep.subr.mxu0 %v4710_v34 }
 0x50a   :  { %4342 = vmatmul.mubr.msk.f32.vlgmr.msra.gmra.mxu0 %vm218_vm2, %v934_v28 }
 0x50b   :  { %4350 = vmatpush3.msra.mxu0 %v1398_v30  ;;  %4351 = vmatprep.mubr.msk.f32.mxu0 %vm4711_vm1, %v4710_v34 }
 0x50c   :  { %4359 = vmatprep.subr.mxu0 %v1584_v60 }
 0x50e   :  { %4352 = vmatmul.mubr.msk.f32.vlgmr.msra.gmra.mxu0 %vm218_vm2, %v938_v32 }
 0x50f   :  { %4360 = vmatpush3.msra.mxu0 %v1584_v60  ;;  %v1878_v60 = vld [vmem:[%s5529_s12 + $0x68] sm:$0xff] }
 0x510   :  { %4361 = vmatprep.subr.mxu0 %v1583_v61 }
 0x511   :  { %4362 = vmatpush3.msra.mxu0 %v1583_v61  ;;  %v1877_v61 = vld [vmem:[%s5529_s12 + $0x60] sm:$0xff] }
 0x512   :  { %v912_v36 = vpop.xlane.xlu1 %911  ;;  %4363 = vmatprep.subr.mxu0 %v1582_v62 }
 0x513   :  { %4616 = vrcp.f32 %v912_v36  ;;  %4364 = vmatpush3.msra.mxu0 %v1582_v62  ;;  %v1720_v36 = vld [vmem:[%s5527_s10 + $0x8] sm:$0xff]  ;;  %v1876_v62 = vld [vmem:[%s5529_s12 + $0x58] sm:$0xff] }
 0x514   :  { %4365 = vmatprep.subr.mxu0 %v1581_v63 }
 0x515   :  { %4366 = vmatpush3.msra.mxu0 %v1581_v63  ;;  %v1875_v63 = vld [vmem:[%s5529_s12 + $0x50] sm:$0xff] }
 0x516   :  { %v918_v37 = vpop.xlane.xlu1 %917 }
 0x517   :  { %4618 = vrcp.f32 %v918_v37  ;;  %v1719_v37 = vld [vmem:[%s5527_s10] sm:$0xff] }
 0x51a   :  { %v924_v40 = vpop.xlane.xlu1 %923 }
 0x51b   :  { %4620 = vrcp.f32 %v924_v40 }
 0x51e   :  { %v1474_v48 = vpop.permute.xlu1 %1473 }
 0x520   :  { %v4617_v41 = vpop.eup %4616 }
 0x521   :  { %v932_v45 = vmul.f32 %v4617_v41, %v4601_v11 }
 0x523   :  { %4337 = vmatmul.mubr.msk.f32.vlgmr.msra.gmra.mxu1 %vm218_vm2, %v932_v45 }
 0x524   :  { %v4619_v38 = vpop.eup %4618  ;;  %4345 = vmatpush3.msra.mxu1 %v1322_v35  ;;  %4346 = vmatprep.mubr.msk.f32.mxu1 %vm4711_vm1, %v4710_v34  ;;  %v1721_v35 = vld [vmem:[%s5527_s10 + $0x10] sm:$0xff] }
 0x525   :  { %4354 = vmatprep.subr.mxu1 %v4710_v34  ;;  %v936_v47 = vmul.f32 %v4619_v38, %v4603_v13 }
 0x527   :  { %4347 = vmatmul.mubr.msk.f32.vlgmr.msra.gmra.mxu1 %vm218_vm2, %v936_v47 }
 0x528   :  { %v4621_v49 = vpop.eup %4620  ;;  %4355 = vmatpush3.msra.mxu1 %v1474_v48  ;;  %4356 = vmatprep.mubr.msk.f32.mxu1 %vm4711_vm1, %v4710_v34 }
 0x529   :  { %v940_v50 = vmul.f32 %v4621_v49, %v5008_v15 }
 0x52b   :  { %4357 = vmatmul.mubr.msk.f32.vlgmr.msra.gmra.mxu1 %vm218_vm2, %v940_v50  ;;  %v4043_v50 = vld [vmem:[%s5525_s8] ss:$0 sm:$0xff] }
 0x5ae   :  { %v1089_v51 = vpop.f32.mrf.mxu1 }
 0x5af   :  { %1550 = vrot.lane.b32.xlu0 %v1089_v51, %s4717_s26 }
 0x5b0   :  { %v4328_v52 = vpop.f32.mrf.mxu1 }
 0x5b1   :  { %v4044_v52 = vld [vmem:[%s5526_s9] ss:$0 sm:$0xff] }
 0x5be   :  { %v1013_v42 = vpop.f32.mrf.mxu0 }
 0x5c0   :  { %v4323_v53 = vpop.f32.mrf.mxu0 }
 0x5c6   :  { %v1165_v54 = vpop.f32.mrf.mxu0 }
 0x5c7   :  { %1554 = vrot.lane.b32.xlu1 %v1165_v54, %s4718_s27 }
 0x5c8   :  { %v4333_v55 = vpop.f32.mrf.mxu0 }
 0x5ca   :  { %v1317_v56 = vpop.f32.mrf.mxu0 }
 0x5cc   :  { %v4343_v57 = vpop.f32.mrf.mxu0 }
 0x5ce   :  { %v1469_v58 = vpop.f32.mrf.mxu0 }
 0x5d0   :  { %v4353_v59 = vpop.f32.mrf.mxu0 }
 0x5d1   :  { %v1879_v59 = vld [vmem:[%s5529_s12 + $0x70] sm:$0xff] }
 0x5e3   :  { %v1241_v0 = vpop.f32.mrf.mxu1 }
 0x5e4   :  { %1558 = vrot.lane.b32.xlu1 %v1241_v0, %s5538_s28  ;;  %v1874_v0 = vld [vmem:[%s5529_s12 + $0x48] sm:$0xff] }
 0x5e5   :  { %v4338_v1 = vpop.f32.mrf.mxu1 }
 0x5e6   :  { %v1873_v1 = vld [vmem:[%s5529_s12 + $0x40] sm:$0xff] }
 0x5e7   :  { %v1393_v2 = vpop.f32.mrf.mxu1 }
 0x5e8   :  { %1567 = vrot.lane.b32.xlu0 %v1393_v2, %s4717_s26  ;;  %v1872_v2 = vld [vmem:[%s5529_s12 + $0x38] sm:$0xff] }
 0x5e9   :  { %v4348_v3 = vpop.f32.mrf.mxu1 }
 0x5ea   :  { %v1871_v3 = vld [vmem:[%s5529_s12 + $0x30] sm:$0xff] }
 0x5eb   :  { %v1545_v4 = vpop.f32.mrf.mxu1 }
 0x5ec   :  { %1575 = vrot.lane.b32.xlu1 %v1545_v4, %s5538_s28  ;;  %1571 = vrot.lane.b32.xlu0 %v1469_v58, %s4718_s27  ;;  %v1880_v58 = vld [vmem:[%s5529_s12 + $0x78] sm:$0xff]  ;;  %v1870_v4 = vld [vmem:[%s5529_s12 + $0x28] sm:$0xff] }
 0x5ed   :  { %v4358_v5 = vpop.f32.mrf.mxu1  ;;  %4381 = vmatprep.subr.mxu0 %v1880_v58 }
 0x5ee   :  { %v1869_v5 = vld [vmem:[%s5529_s12 + $0x20] sm:$0xff] }
 0x621   :  { %v1551_v6 = vpop.permute.xlu0 %1550 }
 0x622   :  { %v1561_v8 = vsel %vm218_vm2, %v1013_v42, %v1551_v6  ;;  %v1868_v6 = vld [vmem:[%s5529_s12 + $0x18] sm:$0xff] }
 0x639   :  { %v1555_v7 = vpop.permute.xlu1 %1554 }
 0x63a   :  { %v1563_v9 = vsel %vm1562_vm3, %v1561_v8, %v1555_v7  ;;  %v1867_v7 = vld [vmem:[%s5529_s12 + $0x10] sm:$0xff]  ;;  %v1866_v8 = vld [vmem:[%s5529_s12 + $0x8] sm:$0xff] }
 0x656   :  { %v1559_v10 = vpop.permute.xlu1 %1558 }
 0x657   :  { %v1565_v44 = vsel %vm1564_vm4, %v1563_v9, %v1559_v10  ;;  %v1865_v9 = vld [vmem:[%s5529_s12] sm:$0xff] }
 0x658   :  { %4367 = vmatprep.mubr.msk.f32.mxu0 %vm64_vm0, %v1565_v44  ;;  %v4045_v10 = vld [vmem:[%s5528_s11] ss:$0 sm:$0xff] }
 0x65a   :  { %v1568_v11 = vpop.permute.xlu0 %1567 }
 0x65b   :  { %v1578_v12 = vsel %vm218_vm2, %v1317_v56, %v1568_v11 }
 0x65e   :  { %v1576_v13 = vpop.permute.xlu1 %1575  ;;  %v1572_v14 = vpop.permute.xlu0 %1571 }
 0x65f   :  { %v1579_v15 = vsel %vm1562_vm3, %v1578_v12, %v1572_v14 }
 0x660   :  { %v1580_v16 = vsel %vm1564_vm4, %v1579_v15, %v1576_v13 }
 0x661   :  { %4368 = vmatmul.mubr.msk.f32.vlgmr.msra.gmra.mxu0 %vm64_vm0, %v1580_v16 }
 0x662   :  { %4382 = vmatpush3.msra.mxu0 %v1880_v58 }
 0x663   :  { %4383 = vmatprep.subr.mxu0 %v1879_v59 }
 0x664   :  { %4384 = vmatpush3.msra.mxu0 %v1879_v59 }
 0x665   :  { %4385 = vmatprep.subr.mxu0 %v1878_v60 }
 0x666   :  { %4386 = vmatpush3.msra.mxu0 %v1878_v60 }
 0x667   :  { %4387 = vmatprep.subr.mxu0 %v1877_v61 }
 0x668   :  { %4388 = vmatpush3.msra.mxu0 %v1877_v61 }
 0x669   :  { %4389 = vmatprep.subr.mxu0 %v1876_v62 }
 0x66a   :  { %4390 = vmatpush3.msra.mxu0 %v1876_v62 }
 0x66b   :  { %4391 = vmatprep.subr.mxu0 %v1875_v63 }
 0x66c   :  { %4392 = vmatpush3.msra.mxu0 %v1875_v63 }
 0x66d   :  { %4393 = vmatprep.subr.mxu0 %v1874_v0 }
 0x66e   :  { %4394 = vmatpush3.msra.mxu0 %v1874_v0 }
 0x66f   :  { %4395 = vmatprep.subr.mxu0 %v1873_v1 }
 0x670   :  { %4396 = vmatpush3.msra.mxu0 %v1873_v1 }
 0x671   :  { %4397 = vmatprep.subr.mxu0 %v1872_v2 }
 0x672   :  { %4398 = vmatpush3.msra.mxu0 %v1872_v2 }
 0x673   :  { %4399 = vmatprep.subr.mxu0 %v1871_v3 }
 0x674   :  { %4400 = vmatpush3.msra.mxu0 %v1871_v3 }
 0x675   :  { %4401 = vmatprep.subr.mxu0 %v1870_v4 }
 0x676   :  { %4402 = vmatpush3.msra.mxu0 %v1870_v4  ;;  %v4048_v4 = vld [vmem:[%s5530_s13] ss:$0 sm:$0xff] }
 0x677   :  { %4403 = vmatprep.subr.mxu0 %v1869_v5 }
 0x678   :  { %4404 = vmatpush3.msra.mxu0 %v1869_v5 }
 0x679   :  { %4405 = vmatprep.subr.mxu0 %v1868_v6 }
 0x67a   :  { %4406 = vmatpush3.msra.mxu0 %v1868_v6 }
 0x67b   :  { %4407 = vmatprep.subr.mxu0 %v1867_v7 }
 0x67c   :  { %4408 = vmatpush3.msra.mxu0 %v1867_v7 }
 0x67d   :  { %4409 = vmatprep.subr.mxu0 %v1866_v8 }
 0x67e   :  { %4410 = vmatpush3.msra.mxu0 %v1866_v8 }
 0x67f   :  { %4411 = vmatprep.subr.mxu0 %v1865_v9 }
 0x680   :  { %4412 = vmatpush3.msra.mxu0 %v1865_v9 }
 0x681   :  { %4457 = vmatprep.subr.mxu0 %v4710_v34 }
 0x721   :  { %v4369_v17 = vpop.f32.mrf.mxu0 }
 0x722   :  { %v1670_v43 = vadd.f32 %v4369_v17, %v4040_v39 }
 0x723   :  { %v1664_v18 = vpop.f32.mrf.mxu0 }
 0x724   :  { %v1665_v19 = vadd.f32 %v4040_v39, %v1664_v18  ;;  %v1674_v20 = vadd.f32 %v1670_v43, %v4848_v33 }
 0x726   :  { %v1680_v21 = vsel %vm64_vm0, %v1674_v20, 0.0  ;;  %v1673_v22 = vadd.f32 %v1665_v19, %v4844_v31  ;;  %v1722_v31 = vld [vmem:[%s5527_s10 + $0x18] sm:$0xff] }
 0x727   :  { %1681 = vadd.xlane.f32.xlu1 %v1680_v21  ;;  %4370 = vmatprep.subr.mxu1 %v1722_v31 }
 0x728   :  { %v1677_v46 = vsel %vm64_vm0, %v1673_v22, 0.0  ;;  %4371 = vmatpush3.msra.mxu1 %v1722_v31 }
 0x729   :  { %1678 = vadd.xlane.f32.xlu0 %v1677_v46  ;;  %4372 = vmatprep.subr.mxu1 %v1721_v35 }
 0x72a   :  { %4373 = vmatpush3.msra.mxu1 %v1721_v35 }
 0x72b   :  { %4374 = vmatprep.subr.mxu1 %v1720_v36 }
 0x72c   :  { %4375 = vmatpush3.msra.mxu1 %v1720_v36 }
 0x72d   :  { %4376 = vmatprep.subr.mxu1 %v1719_v37 }
 0x72e   :  { %4377 = vmatpush3.msra.mxu1 %v1719_v37 }
 0x7b0   :  { %v1682_v23 = vpop.xlane.xlu1 %1681 }
 0x7b1   :  { %v1684_v24 = vmul.f32 0.03125, %v1682_v23 }
 0x7b2   :  { %v1679_v25 = vpop.xlane.xlu0 %1678 }
 0x7b3   :  { %v1683_v26 = vmul.f32 0.03125, %v1679_v25  ;;  %v1686_v27 = vsub.f32 %v1674_v20, %v1684_v24 }
 0x7b5   :  { %v1685_v28 = vsub.f32 %v1673_v22, %v1683_v26  ;;  %v1688_v32 = vmul.f32 %v1686_v27, %v1686_v27 }
 0x7b7   :  { %v1687_v29 = vmul.f32 %v1685_v28, %v1685_v28  ;;  %v1692_v33 = vsel %vm64_vm0, %v1688_v32, 0.0 }
 0x7b9   :  { %v1689_v30 = vsel %vm64_vm0, %v1687_v29, 0.0 }
 0x7ba   :  { %1690 = vadd.xlane.f32.xlu0 %v1689_v30 }
 0x7be   :  { %1693 = vadd.xlane.f32.xlu0 %v1692_v33 }
 0x843   :  { %v1691_v40 = vpop.xlane.xlu0 %1690 }
 0x844   :  { %v1695_v41 = vmul.f32 0.03125, %v1691_v40 }
 0x846   :  { %v1697_v45 = vadd.f32 1e-12, %v1695_v41 }
 0x847   :  { %v1694_v38 = vpop.xlane.xlu0 %1693 }
 0x848   :  { %4622 = vrsqrt.f32 %v1697_v45  ;;  %v1696_v47 = vmul.f32 0.03125, %v1694_v38 }
 0x84a   :  { %v1698_v48 = vadd.f32 1e-12, %v1696_v47 }
 0x84c   :  { %4624 = vrsqrt.f32 %v1698_v48 }
 0x855   :  { %v4623_v49 = vpop.eup %4622 }
 0x856   :  { %v1701_v51 = vmul.f32 %v4623_v49, %v1685_v28 }
 0x858   :  { %v1709_v42 = vmul.f32 %v4043_v50, %v1701_v51 }
 0x859   :  { %v4625_v53 = vpop.eup %4624 }
 0x85a   :  { %v1702_v54 = vmul.f32 %v4625_v53, %v1686_v27  ;;  %v5094_v55 = vadd.f32 %v4044_v52, %v1709_v42 }
 0x85c   :  { %v1710_v56 = vmul.f32 %v4043_v50, %v1702_v54  ;;  %4378 = vmatprep.mubr.msk.f32.mxu1 %vm64_vm0, %v5094_v55 }
 0x85e   :  { %v5098_v57 = vadd.f32 %v4044_v52, %v1710_v56 }
 0x860   :  { %4379 = vmatmul.mubr.msk.f32.vlgmr.msra.gmra.mxu1 %vm64_vm0, %v5098_v57 }
 0x920   :  { %v4380_v44 = vpop.f32.mrf.mxu1 }
 0x921   :  { %v1808_v11 = vadd.f32 %v4380_v44, %v4045_v10 }
 0x922   :  { %v1802_v12 = vpop.f32.mrf.mxu1 }
 0x923   :  { %v1814_v13 = vmul.f32 0.70710677, %v1808_v11  ;;  %v1803_v14 = vadd.f32 %v4045_v10, %v1802_v12  ;;  %v1812_v1 = vmul.f32 0.5, %v1808_v11 }
 0x925   :  { %v1816_v15 = vand.u32 2147483647, %v1814_v13  ;;  %v1813_v16 = vmul.f32 0.70710677, %v1803_v14  ;;  %vm1856_vm5 = vcmp.ge.f32.partialorder %v1814_v13, 0.0  ;;  %v1811_v63 = vmul.f32 0.5, %v1803_v14 }
 0x927   :  { %v1818_v39 = vmul.f32 0.3275911, %v1816_v15  ;;  %v1815_v17 = vand.u32 2147483647, %v1813_v16  ;;  %v1844_v20 = vsub.f32 0.0, %v1816_v15  ;;  %vm1855_vm6 = vcmp.ge.f32.partialorder %v1813_v16, 0.0 }
 0x929   :  { %v1820_v43 = vadd.f32 1.0, %v1818_v39  ;;  %v1817_v18 = vmul.f32 0.3275911, %v1815_v17  ;;  %v1843_v21 = vsub.f32 0.0, %v1815_v17  ;;  %v1846_v22 = vmul.f32 %v1844_v20, %v1816_v15  ;;  %v4052_v20 = vld [vmem:[%s5521_s4 + $0x28] sm:$0xff] }
 0x92b   :  { %4626 = vrcp.f32 %v1820_v43  ;;  %v1819_v19 = vadd.f32 1.0, %v1817_v18  ;;  %v1845_v23 = vmul.f32 %v1843_v21, %v1815_v17  ;;  %v1849_v25 = vmul.f32 1.442695, %v1846_v22  ;;  %v4051_v21 = vld [vmem:[%s5521_s4 + $0x20] sm:$0xff] }
 0x92d   :  { %4628 = vrcp.f32 %v1819_v19  ;;  %v1847_v28 = vmul.f32 1.442695, %v1845_v23  ;;  %v4053_v19 = vld [vmem:[%s5521_s4 + $0x30] sm:$0xff] }
 0x92e   :  { %4630 = vpow2.f32 %v1849_v25 }
 0x92f   :  { %4632 = vpow2.f32 %v1847_v28  ;;  %v4049_v28 = vld [vmem:[%s5531_s14] ss:$0 sm:$0xff] }
 0x938   :  { %v4627_v46 = vpop.eup %4626 }
 0x939   :  { %v1826_v24 = vmul.f32 1.0614054, %v4627_v46 }
 0x93a   :  { %v4629_v26 = vpop.eup %4628 }
 0x93b   :  { %v1828_v27 = vadd.f32 -1.4531521, %v1826_v24  ;;  %v1825_v29 = vmul.f32 1.0614054, %v4629_v26  ;;  %v4631_v49 = vpop.eup %4630 }
 0x93c   :  { %v4633_v42 = vpop.eup %4632 }
 0x93d   :  { %v1830_v30 = vmul.f32 %v4627_v46, %v1828_v27  ;;  %v1827_v32 = vadd.f32 -1.4531521, %v1825_v29 }
 0x93f   :  { %v1832_v33 = vadd.f32 1.4214138, %v1830_v30  ;;  %v1829_v31 = vmul.f32 %v4629_v26, %v1827_v32 }
 0x941   :  { %v1834_v35 = vmul.f32 %v4627_v46, %v1832_v33  ;;  %v1831_v36 = vadd.f32 1.4214138, %v1829_v31  ;;  %v4050_v31 = vld [vmem:[%s5532_s15] ss:$0 sm:$0xff] }
 0x943   :  { %v1836_v37 = vadd.f32 -0.28449672, %v1834_v35  ;;  %v1833_v40 = vmul.f32 %v4629_v26, %v1831_v36 }
 0x945   :  { %v1838_v41 = vmul.f32 %v4627_v46, %v1836_v37  ;;  %v1835_v45 = vadd.f32 -0.28449672, %v1833_v40 }
 0x947   :  { %v1840_v38 = vadd.f32 0.2548296, %v1838_v41  ;;  %v1837_v47 = vmul.f32 %v4629_v26, %v1835_v45  ;;  %v4056_v41 = vld [vmem:[%s5522_s5 + $0x1] ss:$0 sm:$0xff] }
 0x949   :  { %v1842_v48 = vmul.f32 %v4627_v46, %v1840_v38  ;;  %v1839_v50 = vadd.f32 0.2548296, %v1837_v47 }
 0x94b   :  { %v1852_v51 = vmul.f32 %v4631_v49, %v1842_v48  ;;  %v1841_v52 = vmul.f32 %v4629_v26, %v1839_v50 }
 0x94d   :  { %v1854_v53 = vsub.f32 1.0, %v1852_v51  ;;  %v1851_v54 = vmul.f32 %v4633_v42, %v1841_v52 }
 0x94f   :  { %v1858_v56 = vsub.f32 0.0, %v1854_v53  ;;  %v1853_v58 = vsub.f32 1.0, %v1851_v54 }
 0x951   :  { %v1860_v59 = vsel %vm1856_vm5, %v1854_v53, %v1858_v56  ;;  %v1857_v60 = vsub.f32 0.0, %v1853_v58 }
 0x952   :  { %v1862_v61 = vadd.f32 1.0, %v1860_v59 }
 0x953   :  { %v1859_v62 = vsel %vm1855_vm6, %v1853_v58, %v1857_v60 }
 0x954   :  { %v1861_v0 = vadd.f32 1.0, %v1859_v62  ;;  %v1864_v3 = vmul.f32 %v1862_v61, %v1812_v1 }
 0x956   :  { %v1863_v2 = vmul.f32 %v1861_v0, %v1811_v63 }
 0x958   :  { %4413 = vmatprep.mubr.f32.mxu0 %v1863_v2  ;;  %v4686_v2 = vld [vmem:[%s5545_s2] ss:$0 sm:$0xff] }
 0x959   :  { %4414 = vmatmul.mubr.f32.vlgmr.msra.gmra.mxu0 %v1864_v3 }
 0x95a   :  { %4459 = vmatprep.mubr.msk.f32.mxu0 %vm4711_vm1, %v4710_v34 }
 0xa19   :  { %v4415_v5 = vpop.f32.mrf.mxu0 }
 0xa1a   :  { %v1960_v6 = vadd.f32 %v4415_v5, %v4048_v4 }
 0xa1b   :  { %v1954_v7 = vpop.f32.mrf.mxu0 }
 0xa1c   :  { %v1955_v8 = vadd.f32 %v4048_v4, %v1954_v7  ;;  %v1964_v9 = vadd.f32 %v1960_v6, %v5098_v57 }
 0xa1e   :  { %v1970_v10 = vsel %vm64_vm0, %v1964_v9, 0.0  ;;  %v1963_v44 = vadd.f32 %v1955_v8, %v5094_v55  ;;  %v4054_v55 = vld [vmem:[%s5521_s4 + $0x38] sm:$0xff]  ;;  %s5546_s4 = smov 24  }
 0xa1f   :  { %1971 = vadd.xlane.f32.xlu1 %v1970_v10  ;;  %4416 = vmatprep.subr.mxu1 %v4054_v55 }
 0xa20   :  { %v1967_v11 = vsel %vm64_vm0, %v1963_v44, 0.0  ;;  %4417 = vmatpush3.msra.mxu1 %v4054_v55 }
 0xa21   :  { %1968 = vadd.xlane.f32.xlu0 %v1967_v11  ;;  %4418 = vmatprep.subr.mxu1 %v4053_v19 }
 0xa22   :  { %4419 = vmatpush3.msra.mxu1 %v4053_v19 }
 0xa23   :  { %4420 = vmatprep.subr.mxu1 %v4052_v20 }
 0xa24   :  { %4421 = vmatpush3.msra.mxu1 %v4052_v20 }
 0xa25   :  { %4422 = vmatprep.subr.mxu1 %v4051_v21 }
 0xa26   :  { %4423 = vmatpush3.msra.mxu1 %v4051_v21  ;;  %v4687_v21 = vld [vmem:[%s5545_s2 + $0x1] ss:$0 sm:$0xff] }
 0xa27   :  { %4427 = vmatprep.subr.mxu1 %v4710_v34 }
 0xaa8   :  { %v1972_v12 = vpop.xlane.xlu1 %1971 }
 0xaa9   :  { %v1974_v13 = vmul.f32 0.03125, %v1972_v12 }
 0xaaa   :  { %v1969_v14 = vpop.xlane.xlu0 %1968 }
 0xaab   :  { %v1976_v15 = vsub.f32 %v1964_v9, %v1974_v13  ;;  %v1973_v16 = vmul.f32 0.03125, %v1969_v14 }
 0xaad   :  { %v1975_v39 = vsub.f32 %v1963_v44, %v1973_v16  ;;  %v1978_v17 = vmul.f32 %v1976_v15, %v1976_v15 }
 0xaaf   :  { %v1982_v43 = vsel %vm64_vm0, %v1978_v17, 0.0  ;;  %v1977_v18 = vmul.f32 %v1975_v39, %v1975_v39 }
 0xab0   :  { %1983 = vadd.xlane.f32.xlu1 %v1982_v43 }
 0xab1   :  { %v1979_v57 = vsel %vm64_vm0, %v1977_v18, 0.0 }
 0xab2   :  { %1980 = vadd.xlane.f32.xlu0 %v1979_v57 }
 0xb39   :  { %v1984_v22 = vpop.xlane.xlu1 %1983 }
 0xb3a   :  { %v1986_v46 = vmul.f32 0.03125, %v1984_v22 }
 0xb3b   :  { %v1981_v23 = vpop.xlane.xlu0 %1980 }
 0xb3c   :  { %v1988_v24 = vadd.f32 1e-12, %v1986_v46  ;;  %v1985_v25 = vmul.f32 0.03125, %v1981_v23 }
 0xb3e   :  { %4634 = vrsqrt.f32 %v1988_v24  ;;  %v1987_v26 = vadd.f32 1e-12, %v1985_v25 }
 0xb40   :  { %4636 = vrsqrt.f32 %v1987_v26 }
 0xb4b   :  { %v4635_v27 = vpop.eup %4634 }
 0xb4c   :  { %v1992_v29 = vmul.f32 %v4635_v27, %v1976_v15 }
 0xb4d   :  { %v4637_v30 = vpop.eup %4636 }
 0xb4e   :  { %v1991_v32 = vmul.f32 %v4637_v30, %v1975_v39  ;;  %v2000_v33 = vmul.f32 %v4049_v28, %v1992_v29 }
 0xb50   :  { %v1999_v35 = vmul.f32 %v4049_v28, %v1991_v32  ;;  %v5186_v37 = vadd.f32 %v4050_v31, %v2000_v33 }
 0xb52   :  { %v5184_v36 = vadd.f32 %v4050_v31, %v1999_v35 }
 0xb54   :  { %4424 = vmatprep.mubr.msk.f32.mxu1 %vm64_vm0, %v5184_v36 }
 0xb55   :  { %4425 = vmatmul.mubr.msk.f32.vlgmr.msra.gmra.mxu1 %vm64_vm0, %v5186_v37 }
 0xb56   :  { %4429 = vmatprep.mubr.msk.f32.mxu1 %vm4711_vm1, %v4710_v34 }
 0xc15   :  { %v4426_v40 = vpop.f32.mrf.mxu1 }
 0xc16   :  { %v5203_v47 = vadd.f32 %v4426_v40, %v4056_v41 }
 0xc17   :  { %v2094_v45 = vpop.f32.mrf.mxu1 }
 0xc18   :  { %v5197_v38 = vadd.f32 %v4056_v41, %v2094_v45 }
 0xc1a   :  { %2106 = vrot.lane.b32.xlu1 %v5197_v38, %s4712_s0  ;;  %2104 = vrot.lane.b32.xlu0 %v5197_v38, %s4713_s19 }
 0xc1e   :  { %2108 = vrot.lane.b32.xlu1 %v5197_v38, %s4714_s1  ;;  %2113 = vrot.lane.b32.xlu0 %v5203_v47, %s4712_s0 }
 0xc22   :  { %2111 = vrot.lane.b32.xlu1 %v5203_v47, %s4713_s19  ;;  %2117 = vrot.lane.b32.xlu0 %v5197_v38, %s4715_s20 }
 0xc26   :  { %2115 = vrot.lane.b32.xlu1 %v5203_v47, %s4714_s1 }
 0xc8c   :  { %v5215_v48 = vpop.permute.xlu1 %2106  ;;  %v5217_v49 = vpop.permute.xlu0 %2104 }
 0xc8d   :  { %2269 = vrot.lane.b32.xlu0 %v5215_v48, %s4715_s20  ;;  %2193 = vrot.lane.b32.xlu1 %v5217_v49, %s4715_s20 }
 0xc90   :  { %v5223_v50 = vpop.permute.xlu1 %2108  ;;  %v5225_v51 = vpop.permute.xlu0 %2113 }
 0xc91   :  { %2421 = vrot.lane.b32.xlu0 %v5203_v47, %s4715_s20  ;;  %2345 = vrot.lane.b32.xlu1 %v5223_v50, %s4715_s20 }
 0xc94   :  { %v5231_v52 = vpop.permute.xlu1 %2111  ;;  %v2118_v42 = vpop.permute.xlu0 %2117 }
 0xc95   :  { %2497 = vrot.lane.b32.xlu1 %v5231_v52, %s4715_s20  ;;  %2573 = vrot.lane.b32.xlu0 %v5225_v51, %s4715_s20 }
 0xc96   :  { %4428 = vmatpush3.xpose.msk.msra.mxu1 %vm218_vm2, %v2118_v42 }
 0xc97   :  { %4432 = vmatprep.subr.mxu1 %v4710_v34 }
 0xc98   :  { %v5239_v53 = vpop.permute.xlu1 %2115 }
 0xc99   :  { %4430 = vmatmul.mubr.msk.f32.vlgmr.msra.gmra.mxu1 %vm218_vm2, %v5197_v38  ;;  %2649 = vrot.lane.b32.xlu1 %v5239_v53, %s4715_s20 }
 0xc9a   :  { %4434 = vmatprep.mubr.msk.f32.mxu1 %vm4711_vm1, %v4710_v34 }
 0xcff   :  { %v2194_v54 = vpop.permute.xlu1 %2193  ;;  %v2270_v56 = vpop.permute.xlu0 %2269 }
 0xd00   :  { %4433 = vmatpush3.xpose.msk.msra.mxu1 %vm218_vm2, %v2194_v54 }
 0xd01   :  { %4437 = vmatprep.subr.mxu1 %v4710_v34 }
 0xd03   :  { %4435 = vmatmul.mubr.msk.f32.vlgmr.msra.gmra.mxu1 %vm218_vm2, %v5217_v49  ;;  %v2422_v58 = vpop.permute.xlu0 %2421  ;;  %v2346_v59 = vpop.permute.xlu1 %2345 }
 0xd04   :  { %4438 = vmatpush3.xpose.msk.msra.mxu1 %vm218_vm2, %v2270_v56  ;;  %4439 = vmatprep.mubr.msk.f32.mxu1 %vm4711_vm1, %v4710_v34 }
 0xd05   :  { %4442 = vmatprep.subr.mxu1 %v4710_v34 }
 0xd07   :  { %4440 = vmatmul.mubr.msk.f32.vlgmr.msra.gmra.mxu1 %vm218_vm2, %v5215_v48  ;;  %v2574_v60 = vpop.permute.xlu0 %2573  ;;  %v2498_v61 = vpop.permute.xlu1 %2497 }
 0xd08   :  { %4443 = vmatpush3.xpose.msk.msra.mxu1 %vm218_vm2, %v2346_v59  ;;  %4458 = vmatpush3.xpose.msk.msra.mxu0 %vm218_vm2, %v2574_v60 }
 0xd09   :  { %4444 = vmatprep.mubr.msk.f32.mxu1 %vm4711_vm1, %v4710_v34  ;;  %4447 = vmatprep.subr.mxu1 %v4710_v34 }
 0xd0a   :  { %4467 = vmatprep.subr.mxu0 %v4710_v34 }
 0xd0b   :  { %4445 = vmatmul.mubr.msk.f32.vlgmr.msra.gmra.mxu1 %vm218_vm2, %v5223_v50  ;;  %4460 = vmatmul.mubr.msk.f32.vlgmr.msra.gmra.mxu0 %vm218_vm2, %v5225_v51  ;;  %v2650_v62 = vpop.permute.xlu1 %2649 }
 0xd0c   :  { %4448 = vmatpush3.xpose.msk.msra.mxu1 %vm218_vm2, %v2422_v58  ;;  %4449 = vmatprep.mubr.msk.f32.mxu1 %vm4711_vm1, %v4710_v34 }
 0xd0d   :  { %4452 = vmatprep.subr.mxu1 %v4710_v34  ;;  %4469 = vmatprep.mubr.msk.f32.mxu0 %vm4711_vm1, %v4710_v34 }
 0xd0f   :  { %4450 = vmatmul.mubr.msk.f32.vlgmr.msra.gmra.mxu1 %vm218_vm2, %v5203_v47 }
 0xd10   :  { %4453 = vmatpush3.xpose.msk.msra.mxu1 %vm218_vm2, %v2498_v61  ;;  %4454 = vmatprep.mubr.msk.f32.mxu1 %vm4711_vm1, %v4710_v34 }
 0xd11   :  { %4462 = vmatprep.subr.mxu1 %v4710_v34 }
 0xd13   :  { %4455 = vmatmul.mubr.msk.f32.vlgmr.msra.gmra.mxu1 %vm218_vm2, %v5231_v52 }
 0xd14   :  { %4463 = vmatpush3.xpose.msk.msra.mxu1 %vm218_vm2, %v2650_v62  ;;  %4464 = vmatprep.mubr.msk.f32.mxu1 %vm4711_vm1, %v4710_v34 }
 0xd15   :  { %4472 = vmatprep.subr.mxu1 %v4710_v34 }
 0xd17   :  { %4465 = vmatmul.mubr.msk.f32.vlgmr.msra.gmra.mxu1 %vm218_vm2, %v5239_v53 }
 0xd18   :  { %4474 = vmatprep.mubr.msk.f32.mxu1 %vm4711_vm1, %v4710_v34 }
 0xd59   :  { %v2189_v63 = vpop.f32.mrf.mxu1 }
 0xd5a   :  { %v2725_v0 = vmul.f32 0.35355338, %v2189_v63 }
 0xd5b   :  { %v4431_v1 = vpop.f32.mrf.mxu1 }
 0xd5c   :  { %v2733_v3 = vadd.f32 %v4686_v2, %v2725_v0 }
 0xd5e   :  { %v2741_v4 = vsel %vm218_vm2, %v2733_v3, -inf }
 0xd5f   :  { %2742 = vmax.xlane.f32.xlu0 %v2741_v4 }
 0xdc3   :  { %v2265_v5 = vpop.f32.mrf.mxu1 }
 0xdc4   :  { %v2726_v6 = vmul.f32 0.35355338, %v2265_v5 }
 0xdc5   :  { %v4436_v7 = vpop.f32.mrf.mxu1 }
 0xdc6   :  { %v2734_v8 = vadd.f32 %v4686_v2, %v2726_v6 }
 0xdc7   :  { %v2341_v9 = vpop.f32.mrf.mxu1 }
 0xdc8   :  { %v2727_v10 = vmul.f32 0.35355338, %v2341_v9  ;;  %v2744_v44 = vsel %vm218_vm2, %v2734_v8, -inf }
 0xdc9   :  { %2745 = vmax.xlane.f32.xlu1 %v2744_v44  ;;  %v4441_v11 = vpop.f32.mrf.mxu1 }
 0xdca   :  { %v5294_v12 = vadd.f32 %v4686_v2, %v2727_v10 }
 0xdcb   :  { %v2417_v13 = vpop.f32.mrf.mxu1  ;;  %v2645_v14 = vpop.f32.mrf.mxu0 }
 0xdcc   :  { %v2728_v15 = vmul.f32 0.35355338, %v2417_v13  ;;  %v2747_v16 = vsel %vm218_vm2, %v5294_v12, -inf  ;;  %v2731_v57 = vmul.f32 0.35355338, %v2645_v14 }
 0xdcd   :  { %2748 = vmax.xlane.f32.xlu0 %v2747_v16  ;;  %v4446_v39 = vpop.f32.mrf.mxu1  ;;  %v4461_v17 = vpop.f32.mrf.mxu0 }
 0xdce   :  { %v2736_v43 = vadd.f32 %v4686_v2, %v2728_v15  ;;  %v2739_v25 = vadd.f32 %v4687_v21, %v2731_v57 }
 0xdcf   :  { %v2493_v18 = vpop.f32.mrf.mxu1 }
 0xdd0   :  { %v2729_v55 = vmul.f32 0.35355338, %v2493_v18  ;;  %v2750_v19 = vsel %vm218_vm2, %v2736_v43, -inf  ;;  %v2759_v32 = vsel %vm218_vm2, %v2739_v25, -inf }
 0xdd1   :  { %2751 = vmax.xlane.f32.xlu0 %v2750_v19  ;;  %v4451_v20 = vpop.f32.mrf.mxu1 }
 0xdd2   :  { %v2737_v22 = vadd.f32 %v4687_v21, %v2729_v55 }
 0xdd3   :  { %v2569_v46 = vpop.f32.mrf.mxu1 }
 0xdd4   :  { %v2730_v23 = vmul.f32 0.35355338, %v2569_v46  ;;  %v2753_v24 = vsel %vm218_vm2, %v2737_v22, -inf }
 0xdd5   :  { %2754 = vmax.xlane.f32.xlu0 %v2753_v24  ;;  %v4456_v26 = vpop.f32.mrf.mxu1 }
 0xdd6   :  { %v2738_v27 = vadd.f32 %v4687_v21, %v2730_v23 }
 0xdd7   :  { %v2721_v28 = vpop.f32.mrf.mxu1 }
 0xdd8   :  { %v2732_v29 = vmul.f32 0.35355338, %v2721_v28  ;;  %v2756_v30 = vsel %vm218_vm2, %v2738_v27, -inf }
 0xdd9   :  { %2757 = vmax.xlane.f32.xlu1 %v2756_v30  ;;  %v4466_v33 = vpop.f32.mrf.mxu1  ;;  %2760 = vmax.xlane.f32.xlu0 %v2759_v32 }
 0xdda   :  { %v2740_v31 = vadd.f32 %v4687_v21, %v2732_v29 }
 0xddc   :  { %v2762_v35 = vsel %vm218_vm2, %v2740_v31, -inf }
 0xddd   :  { %2763 = vmax.xlane.f32.xlu1 %v2762_v35 }
 0xde8   :  { %v2743_v40 = vpop.xlane.xlu0 %2742 }
 0xde9   :  { %v2765_v41 = vsub.f32 %v2733_v3, %v2743_v40 }
 0xdeb   :  { %v2773_v45 = vmul.f32 1.442695, %v2765_v41 }
 0xded   :  { %4638 = vpow2.f32 %v2773_v45 }
 0xdee   :  { %2905 = vrot.lane.b32.xlu1 %v5217_v49, %s4716_s25 }
 0xdef   :  { %2829 = vrot.lane.b32.xlu0 %v5197_v38, %s4716_s25 }
 0xdf2   :  { %2981 = vrot.lane.b32.xlu1 %v5215_v48, %s4716_s25 }
 0xdf3   :  { %3133 = vrot.lane.b32.xlu0 %v5203_v47, %s4716_s25 }
 0xdf6   :  { %3057 = vrot.lane.b32.xlu1 %v5223_v50, %s4716_s25 }
 0xdfa   :  { %3209 = vrot.lane.b32.xlu1 %v5231_v52, %s4716_s25  ;;  %v5318_v49 = vpop.eup %4638 }
 0xdfb   :  { %v2789_v38 = vsel %vm218_vm2, %v5318_v49, 0.0 }
 0xe12   :  { %2790 = vadd.xlane.f32.xlu0 %v2789_v38 }
 0xe52   :  { %v2746_v48 = vpop.xlane.xlu1 %2745 }
 0xe53   :  { %v2766_v42 = vsub.f32 %v2734_v8, %v2746_v48 }
 0xe55   :  { %v2775_v54 = vmul.f32 1.442695, %v2766_v42 }
 0xe56   :  { %v2749_v47 = vpop.xlane.xlu0 %2748 }
 0xe57   :  { %4640 = vpow2.f32 %v2775_v54  ;;  %v2767_v52 = vsub.f32 %v5294_v12, %v2749_v47 }
 0xe59   :  { %v2777_v4 = vmul.f32 1.442695, %v2767_v52 }
 0xe5a   :  { %v2752_v56 = vpop.xlane.xlu0 %2751 }
 0xe5b   :  { %v2768_v58 = vsub.f32 %v2736_v43, %v2752_v56 }
 0xe5d   :  { %v2779_v50 = vmul.f32 1.442695, %v2768_v58 }
 0xe5e   :  { %v2755_v59 = vpop.xlane.xlu0 %2754 }
 0xe5f   :  { %4642 = vpow2.f32 %v2779_v50  ;;  %v2769_v5 = vsub.f32 %v2737_v22, %v2755_v59 }
 0xe61   :  { %v2781_v10 = vmul.f32 1.442695, %v2769_v5 }
 0xe62   :  { %v2758_v60 = vpop.xlane.xlu1 %2757  ;;  %v2761_v61 = vpop.xlane.xlu0 %2760 }
 0xe63   :  { %v2770_v62 = vsub.f32 %v2738_v27, %v2758_v60  ;;  %v2771_v63 = vsub.f32 %v2739_v25, %v2761_v61 }
 0xe64   :  { %v4641_v0 = vpop.eup %4640 }
 0xe65   :  { %v2783_v1 = vmul.f32 1.442695, %v2770_v62  ;;  %v2785_v2 = vmul.f32 1.442695, %v2771_v63  ;;  %v2792_v3 = vsel %vm218_vm2, %v4641_v0, 0.0  ;;  %v4086_v62 = vld [vmem:[%s5523_s6 + $0x38] sm:$0xff] }
 0xe66   :  { %2793 = vadd.xlane.f32.xlu1 %v2792_v3  ;;  %v2764_v6 = vpop.xlane.xlu1 %2763  ;;  %v2830_v7 = vpop.permute.xlu0 %2829  ;;  %v4083_v3 = vld [vmem:[%s5523_s6 + $0x20] sm:$0xff] }
 0xe67   :  { %4644 = vpow2.f32 %v2783_v1  ;;  %v2772_v8 = vsub.f32 %v2740_v31, %v2764_v6  ;;  %4468 = vmatpush3.msra.mxu0 %v2830_v7  ;;  %v4084_v1 = vld [vmem:[%s5523_s6 + $0x28] sm:$0xff] }
 0xe68   :  { %4646 = vpow2.f32 %v2785_v2  ;;  %4477 = vmatprep.subr.mxu0 %v4710_v34 }
 0xe69   :  { %v2787_v9 = vmul.f32 1.442695, %v2772_v8  ;;  %4648 = vpow2.f32 %v2777_v4 }
 0xe6a   :  { %v2906_v44 = vpop.permute.xlu1 %2905  ;;  %v3134_v19 = vpop.permute.xlu0 %3133 }
 0xe6b   :  { %4650 = vpow2.f32 %v2787_v9  ;;  %4473 = vmatpush3.msra.mxu1 %v2906_v44 }
 0xe6c   :  { %v4643_v11 = vpop.eup %4642  ;;  %4482 = vmatprep.subr.mxu1 %v4710_v34  ;;  %4652 = vpow2.f32 %v2781_v10 }
 0xe6d   :  { %v2798_v12 = vsel %vm218_vm2, %v4643_v11, 0.0 }
 0xe6e   :  { %2799 = vadd.xlane.f32.xlu1 %v2798_v12  ;;  %v2982_v46 = vpop.permute.xlu1 %2981 }
 0xe72   :  { %v3058_v23 = vpop.permute.xlu1 %3057 }
 0xe74   :  { %v4645_v13 = vpop.eup %4644 }
 0xe75   :  { %v5327_v14 = vpop.eup %4646  ;;  %v2804_v15 = vsel %vm218_vm2, %v4645_v13, 0.0 }
 0xe76   :  { %2805 = vadd.xlane.f32.xlu1 %v2804_v15  ;;  %v2807_v16 = vsel %vm218_vm2, %v5327_v14, 0.0  ;;  %v4649_v39 = vpop.eup %4648 }
 0xe77   :  { %2808 = vadd.xlane.f32.xlu0 %v2807_v16  ;;  %v2795_v18 = vsel %vm218_vm2, %v4649_v39, 0.0 }
 0xe78   :  { %v4651_v17 = vpop.eup %4650 }
 0xe79   :  { %v2810_v43 = vsel %vm218_vm2, %v4651_v17, 0.0  ;;  %v4653_v57 = vpop.eup %4652 }
 0xe7a   :  { %2811 = vadd.xlane.f32.xlu1 %v2810_v43  ;;  %v2801_v55 = vsel %vm218_vm2, %v4653_v57, 0.0 }
 0xe7b   :  { %2796 = vadd.xlane.f32.xlu0 %v2795_v18 }
 0xe7f   :  { %2802 = vadd.xlane.f32.xlu0 %v2801_v55 }
 0xe8b   :  { %3361 = vrot.lane.b32.xlu1 %v5239_v53, %s4716_s25  ;;  %v3210_v53 = vpop.permute.xlu1 %3209 }
 0xe95   :  { %3285 = vrot.lane.b32.xlu0 %v5225_v51, %s4716_s25 }
 0xe9b   :  { %v2791_v20 = vpop.xlane.xlu0 %2790 }
 0xe9c   :  { %4654 = vrcp.f32 %v2791_v20  ;;  %v4088_v20 = vld [vmem:[%s5524_s7 + $0x1] ss:$0 sm:$0xff] }
 0xea9   :  { %v4655_v21 = vpop.eup %4654 }
 0xeaa   :  { %v2814_v22 = vmul.f32 %v4655_v21, %v5318_v49 }
 0xeac   :  { %4470 = vmatmul.mubr.msk.f32.vlgmr.msra.gmra.mxu0 %vm218_vm2, %v2814_v22 }
 0xead   :  { %4478 = vmatpush3.msra.mxu0 %v2982_v46  ;;  %4479 = vmatprep.mubr.msk.f32.mxu0 %vm4711_vm1, %v4710_v34 }
 0xeae   :  { %4487 = vmatprep.subr.mxu0 %v4710_v34 }
 0xeef   :  { %v2794_v24 = vpop.xlane.xlu1 %2793 }
 0xef0   :  { %4656 = vrcp.f32 %v2794_v24 }
 0xef7   :  { %v2800_v51 = vpop.xlane.xlu1 %2799 }
 0xef8   :  { %4658 = vrcp.f32 %v2800_v51 }
 0xefd   :  { %v4657_v25 = vpop.eup %4656 }
 0xefe   :  { %v2816_v26 = vmul.f32 %v4657_v25, %v4641_v0  ;;  %v4085_v0 = vld [vmem:[%s5523_s6 + $0x30] sm:$0xff] }
 0xeff   :  { %v2806_v27 = vpop.xlane.xlu1 %2805 }
 0xf00   :  { %4660 = vrcp.f32 %v2806_v27  ;;  %v2809_v28 = vpop.xlane.xlu0 %2808  ;;  %4475 = vmatmul.mubr.msk.f32.vlgmr.msra.gmra.mxu1 %vm218_vm2, %v2816_v26 }
 0xf01   :  { %4483 = vmatpush3.msra.mxu1 %v3058_v23  ;;  %4484 = vmatprep.mubr.msk.f32.mxu1 %vm4711_vm1, %v4710_v34 }
 0xf02   :  { %4492 = vmatprep.subr.mxu1 %v4710_v34 }
 0xf03   :  { %v2812_v29 = vpop.xlane.xlu1 %2811 }
 0xf04   :  { %4662 = vrcp.f32 %v2812_v29  ;;  %v2797_v30 = vpop.xlane.xlu0 %2796 }
 0xf05   :  { %v4659_v32 = vpop.eup %4658  ;;  %4664 = vrcp.f32 %v2797_v30 }
 0xf06   :  { %v2820_v33 = vmul.f32 %v4659_v32, %v4643_v11 }
 0xf07   :  { %v3362_v41 = vpop.permute.xlu1 %3361 }
 0xf08   :  { %v2803_v31 = vpop.xlane.xlu0 %2802  ;;  %4485 = vmatmul.mubr.msk.f32.vlgmr.msra.gmra.mxu1 %vm218_vm2, %v2820_v33 }
 0xf09   :  { %4666 = vrcp.f32 %v2803_v31  ;;  %4493 = vmatpush3.msra.mxu1 %v3210_v53  ;;  %4494 = vmatprep.mubr.msk.f32.mxu1 %vm4711_vm1, %v4710_v34 }
 0xf0a   :  { %4502 = vmatprep.subr.mxu1 %v4710_v34  ;;  %4668 = vrcp.f32 %v2809_v28 }
 0xf0c   :  { %v3286_v56 = vpop.permute.xlu0 %3285 }
 0xf0d   :  { %v4661_v35 = vpop.eup %4660 }
 0xf0e   :  { %v2824_v40 = vmul.f32 %v4661_v35, %v4645_v13 }
 0xf10   :  { %4495 = vmatmul.mubr.msk.f32.vlgmr.msra.gmra.mxu1 %vm218_vm2, %v2824_v40  ;;  %v4097_v40 = vld [vmem:[%s5527_s10 + $0x30] sm:$0xff] }
 0xf11   :  { %v4663_v45 = vpop.eup %4662  ;;  %4503 = vmatpush3.msra.mxu1 %v3362_v41  ;;  %4504 = vmatprep.mubr.msk.f32.mxu1 %vm4711_vm1, %v4710_v34  ;;  %v4096_v41 = vld [vmem:[%s5527_s10 + $0x28] sm:$0xff] }
 0xf12   :  { %v4665_v49 = vpop.eup %4664  ;;  %v2828_v38 = vmul.f32 %v4663_v45, %v4651_v17  ;;  %v4095_v45 = vld [vmem:[%s5527_s10 + $0x20] sm:$0xff] }
 0xf13   :  { %v2818_v48 = vmul.f32 %v4665_v49, %v4649_v39 }
 0xf14   :  { %4505 = vmatmul.mubr.msk.f32.vlgmr.msra.gmra.mxu1 %vm218_vm2, %v2828_v38 }
 0xf15   :  { %4480 = vmatmul.mubr.msk.f32.vlgmr.msra.gmra.mxu0 %vm218_vm2, %v2818_v48 }
 0xf16   :  { %v4667_v42 = vpop.eup %4666  ;;  %4488 = vmatpush3.msra.mxu0 %v3134_v19  ;;  %4489 = vmatprep.mubr.msk.f32.mxu0 %vm4711_vm1, %v4710_v34 }
 0xf17   :  { %4497 = vmatprep.subr.mxu0 %v4710_v34  ;;  %v2822_v54 = vmul.f32 %v4667_v42, %v4653_v57  ;;  %v4669_v47 = vpop.eup %4668 }
 0xf18   :  { %v2826_v58 = vmul.f32 %v4669_v47, %v5327_v14 }
 0xf19   :  { %4490 = vmatmul.mubr.msk.f32.vlgmr.msra.gmra.mxu0 %vm218_vm2, %v2822_v54 }
 0xf1a   :  { %4498 = vmatpush3.msra.mxu0 %v3286_v56  ;;  %4499 = vmatprep.mubr.msk.f32.mxu0 %vm4711_vm1, %v4710_v34 }
 0xf1b   :  { %4507 = vmatprep.subr.mxu0 %v4086_v62 }
 0xf1d   :  { %4500 = vmatmul.mubr.msk.f32.vlgmr.msra.gmra.mxu0 %vm218_vm2, %v2826_v58  ;;  %v4093_v58 = vld [vmem:[%s5525_s8 + $0x1] ss:$0 sm:$0xff] }
 0xf1e   :  { %4508 = vmatpush3.msra.mxu0 %v4086_v62 }
 0xf1f   :  { %4509 = vmatprep.subr.mxu0 %v4085_v0 }
 0xf20   :  { %4510 = vmatpush3.msra.mxu0 %v4085_v0 }
 0xf21   :  { %4511 = vmatprep.subr.mxu0 %v4084_v1 }
 0xf22   :  { %4512 = vmatpush3.msra.mxu0 %v4084_v1  ;;  %v4118_v1 = vld [vmem:[%s5529_s12 + $0xf8] sm:$0xff] }
 0xf23   :  { %4513 = vmatprep.subr.mxu0 %v4083_v3 }
 0xf24   :  { %4514 = vmatpush3.msra.mxu0 %v4083_v3  ;;  %v4116_v3 = vld [vmem:[%s5529_s12 + $0xe8] sm:$0xff] }
 0xf25   :  { %4529 = vmatprep.subr.mxu0 %v4118_v1 }
 0xf6c   :  { %v2901_v50 = vpop.f32.mrf.mxu0 }
 0xf6e   :  { %v4471_v59 = vpop.f32.mrf.mxu0 }
 0xf6f   :  { %v4094_v59 = vld [vmem:[%s5526_s9 + $0x1] ss:$0 sm:$0xff] }
 0xfc0   :  { %v2977_v52 = vpop.f32.mrf.mxu1 }
 0xfc1   :  { %3438 = vrot.lane.b32.xlu0 %v2977_v52, %s4717_s26 }
 0xfc2   :  { %v4476_v60 = vpop.f32.mrf.mxu1 }
 0xfc8   :  { %v3129_v61 = vpop.f32.mrf.mxu1 }
 0xfca   :  { %v4486_v63 = vpop.f32.mrf.mxu1 }
 0xfd0   :  { %v3281_v2 = vpop.f32.mrf.mxu1 }
 0xfd1   :  { %3453 = vrot.lane.b32.xlu0 %v3281_v2, %s4717_s26  ;;  %v4117_v2 = vld [vmem:[%s5529_s12 + $0xf0] sm:$0xff] }
 0xfd2   :  { %v4496_v4 = vpop.f32.mrf.mxu1 }
 0xfd3   :  { %v4115_v4 = vld [vmem:[%s5529_s12 + $0xe0] sm:$0xff] }
 0xfd4   :  { %v3433_v5 = vpop.f32.mrf.mxu1 }
 0xfd5   :  { %v3053_v6 = vpop.f32.mrf.mxu0 }
 0xfd6   :  { %3442 = vrot.lane.b32.xlu1 %v3053_v6, %s4718_s27  ;;  %v4506_v7 = vpop.f32.mrf.mxu1  ;;  %v4113_v6 = vld [vmem:[%s5529_s12 + $0xd0] sm:$0xff] }
 0xfd7   :  { %v4481_v8 = vpop.f32.mrf.mxu0  ;;  %v4112_v7 = vld [vmem:[%s5529_s12 + $0xc8] sm:$0xff] }
 0xfd8   :  { %v4111_v8 = vld [vmem:[%s5529_s12 + $0xc0] sm:$0xff] }
 0xfd9   :  { %v3205_v9 = vpop.f32.mrf.mxu0 }
 0xfda   :  { %3446 = vrot.lane.b32.xlu1 %v3129_v61, %s5546_s4 }
 0xfdb   :  { %v4491_v10 = vpop.f32.mrf.mxu0 }
 0xfdc   :  { %v4109_v10 = vld [vmem:[%s5529_s12 + $0xb0] sm:$0xff] }
 0xfdd   :  { %v3357_v44 = vpop.f32.mrf.mxu0 }
 0xfde   :  { %3461 = vrot.lane.b32.xlu1 %v3433_v5, %s5546_s4  ;;  %3457 = vrot.lane.b32.xlu0 %v3357_v44, %s4718_s27  ;;  %v4114_v5 = vld [vmem:[%s5529_s12 + $0xd8] sm:$0xff]  ;;  %v4108_v44 = vld [vmem:[%s5529_s12 + $0xa8] sm:$0xff] }
 0xfdf   :  { %v4501_v11 = vpop.f32.mrf.mxu0 }
 0xfe0   :  { %v4107_v11 = vld [vmem:[%s5529_s12 + $0xa0] sm:$0xff] }
0x1033   :  { %v3439_v12 = vpop.permute.xlu0 %3438 }
0x1034   :  { %v3449_v14 = vsel %vm218_vm2, %v2901_v50, %v3439_v12  ;;  %v4106_v12 = vld [vmem:[%s5529_s12 + $0x98] sm:$0xff] }
0x1043   :  { %v3454_v15 = vpop.permute.xlu0 %3453 }
0x1044   :  { %v3464_v43 = vsel %vm218_vm2, %v3205_v9, %v3454_v15  ;;  %v4110_v9 = vld [vmem:[%s5529_s12 + $0xb8] sm:$0xff]  ;;  %v4103_v15 = vld [vmem:[%s5529_s12 + $0x80] sm:$0xff] }
0x1048   :  { %v3443_v13 = vpop.permute.xlu1 %3442 }
0x1049   :  { %v3450_v16 = vsel %vm1562_vm3, %v3449_v14, %v3443_v13  ;;  %v4105_v13 = vld [vmem:[%s5529_s12 + $0x90] sm:$0xff]  ;;  %v4104_v14 = vld [vmem:[%s5529_s12 + $0x88] sm:$0xff] }
0x104c   :  { %v3447_v39 = vpop.permute.xlu1 %3446 }
0x104d   :  { %v3451_v17 = vsel %vm1564_vm4, %v3450_v16, %v3447_v39  ;;  %v4100_v16 = vld [vmem:[%s5528_s11 + $0x1] ss:$0 sm:$0xff] }
0x104e   :  { %4515 = vmatprep.mubr.msk.f32.mxu0 %vm64_vm0, %v3451_v17 }
0x1050   :  { %v3462_v18 = vpop.permute.xlu1 %3461  ;;  %v3458_v57 = vpop.permute.xlu0 %3457 }
0x1051   :  { %v3465_v55 = vsel %vm1562_vm3, %v3464_v43, %v3458_v57 }
0x1052   :  { %v3466_v19 = vsel %vm1564_vm4, %v3465_v55, %v3462_v18 }
0x1053   :  { %4516 = vmatmul.mubr.msk.f32.vlgmr.msra.gmra.mxu0 %vm64_vm0, %v3466_v19 }
0x1054   :  { %4530 = vmatpush3.msra.mxu0 %v4118_v1 }
0x1055   :  { %4531 = vmatprep.subr.mxu0 %v4117_v2 }
0x1056   :  { %4532 = vmatpush3.msra.mxu0 %v4117_v2 }
0x1057   :  { %4533 = vmatprep.subr.mxu0 %v4116_v3 }
0x1058   :  { %4534 = vmatpush3.msra.mxu0 %v4116_v3 }
0x1059   :  { %4535 = vmatprep.subr.mxu0 %v4115_v4 }
0x105a   :  { %4536 = vmatpush3.msra.mxu0 %v4115_v4 }
0x105b   :  { %4537 = vmatprep.subr.mxu0 %v4114_v5 }
0x105c   :  { %4538 = vmatpush3.msra.mxu0 %v4114_v5 }
0x105d   :  { %4539 = vmatprep.subr.mxu0 %v4113_v6 }
0x105e   :  { %4540 = vmatpush3.msra.mxu0 %v4113_v6 }
0x105f   :  { %4541 = vmatprep.subr.mxu0 %v4112_v7 }
0x1060   :  { %4542 = vmatpush3.msra.mxu0 %v4112_v7 }
0x1061   :  { %4543 = vmatprep.subr.mxu0 %v4111_v8 }
0x1062   :  { %4544 = vmatpush3.msra.mxu0 %v4111_v8 }
0x1063   :  { %4545 = vmatprep.subr.mxu0 %v4110_v9 }
0x1064   :  { %4546 = vmatpush3.msra.mxu0 %v4110_v9 }
0x1065   :  { %4547 = vmatprep.subr.mxu0 %v4109_v10 }
0x1066   :  { %4548 = vmatpush3.msra.mxu0 %v4109_v10 }
0x1067   :  { %4549 = vmatprep.subr.mxu0 %v4108_v44 }
0x1068   :  { %4550 = vmatpush3.msra.mxu0 %v4108_v44  ;;  %v4120_v44 = vld [vmem:[%s5530_s13 + $0x1] ss:$0 sm:$0xff] }
0x1069   :  { %4551 = vmatprep.subr.mxu0 %v4107_v11 }
0x106a   :  { %4552 = vmatpush3.msra.mxu0 %v4107_v11 }
0x106b   :  { %4553 = vmatprep.subr.mxu0 %v4106_v12 }
0x106c   :  { %4554 = vmatpush3.msra.mxu0 %v4106_v12 }
0x106d   :  { %4555 = vmatprep.subr.mxu0 %v4105_v13 }
0x106e   :  { %4556 = vmatpush3.msra.mxu0 %v4105_v13 }
0x106f   :  { %4557 = vmatprep.subr.mxu0 %v4104_v14 }
0x1070   :  { %4558 = vmatpush3.msra.mxu0 %v4104_v14 }
0x1071   :  { %4559 = vmatprep.subr.mxu0 %v4103_v15 }
0x1072   :  { %4560 = vmatpush3.msra.mxu0 %v4103_v15 }
0x1113   :  { %v4517_v21 = vpop.f32.mrf.mxu0 }
0x1114   :  { %v3558_v22 = vadd.f32 %v4517_v21, %v4088_v20 }
0x1115   :  { %v3552_v46 = vpop.f32.mrf.mxu0 }
0x1116   :  { %v3562_v23 = vadd.f32 %v3558_v22, %v5186_v37  ;;  %v3553_v53 = vadd.f32 %v4088_v20, %v3552_v46 }
0x1118   :  { %v3561_v24 = vadd.f32 %v3553_v53, %v5184_v36  ;;  %v3570_v51 = vsel %vm64_vm0, %v3562_v23, 0.0  ;;  %v4098_v36 = vld [vmem:[%s5527_s10 + $0x38] sm:$0xff] }
0x1119   :  { %3571 = vadd.xlane.f32.xlu1 %v3570_v51  ;;  %4518 = vmatprep.subr.mxu1 %v4098_v36 }
0x111a   :  { %v3567_v25 = vsel %vm64_vm0, %v3561_v24, 0.0  ;;  %4519 = vmatpush3.msra.mxu1 %v4098_v36 }
0x111b   :  { %3568 = vadd.xlane.f32.xlu0 %v3567_v25  ;;  %4520 = vmatprep.subr.mxu1 %v4097_v40 }
0x111c   :  { %4521 = vmatpush3.msra.mxu1 %v4097_v40 }
0x111d   :  { %4522 = vmatprep.subr.mxu1 %v4096_v41 }
0x111e   :  { %4523 = vmatpush3.msra.mxu1 %v4096_v41 }
0x111f   :  { %4524 = vmatprep.subr.mxu1 %v4095_v45 }
0x1120   :  { %4525 = vmatpush3.msra.mxu1 %v4095_v45 }
0x1121   :  { %4564 = vmatprep.subr.mxu1 %v4710_v34 }
0x11a2   :  { %v3572_v26 = vpop.xlane.xlu1 %3571 }
0x11a3   :  { %v3574_v27 = vmul.f32 0.03125, %v3572_v26 }
0x11a4   :  { %v3569_v28 = vpop.xlane.xlu0 %3568 }
0x11a5   :  { %v3573_v29 = vmul.f32 0.03125, %v3569_v28  ;;  %v3576_v30 = vsub.f32 %v3562_v23, %v3574_v27 }
0x11a7   :  { %v3575_v32 = vsub.f32 %v3561_v24, %v3573_v29  ;;  %v3578_v35 = vmul.f32 %v3576_v30, %v3576_v30 }
0x11a9   :  { %v3577_v33 = vmul.f32 %v3575_v32, %v3575_v32  ;;  %v3582_v37 = vsel %vm64_vm0, %v3578_v35, 0.0 }
0x11ab   :  { %v3579_v31 = vsel %vm64_vm0, %v3577_v33, 0.0 }
0x11ac   :  { %3580 = vadd.xlane.f32.xlu0 %v3579_v31 }
0x11b0   :  { %3583 = vadd.xlane.f32.xlu0 %v3582_v37 }
0x1235   :  { %v3581_v49 = vpop.xlane.xlu0 %3580 }
0x1236   :  { %v3585_v38 = vmul.f32 0.03125, %v3581_v49 }
0x1238   :  { %v3587_v48 = vadd.f32 1e-12, %v3585_v38 }
0x1239   :  { %v3584_v42 = vpop.xlane.xlu0 %3583 }
0x123a   :  { %4670 = vrsqrt.f32 %v3587_v48  ;;  %v3586_v54 = vmul.f32 0.03125, %v3584_v42 }
0x123c   :  { %v3588_v47 = vadd.f32 1e-12, %v3586_v54 }
0x123e   :  { %4672 = vrsqrt.f32 %v3588_v47 }
0x1247   :  { %v4671_v56 = vpop.eup %4670 }
0x1248   :  { %v3591_v50 = vmul.f32 %v4671_v56, %v3575_v32 }
0x124a   :  { %v3599_v52 = vmul.f32 %v4093_v58, %v3591_v50 }
0x124b   :  { %v4673_v60 = vpop.eup %4672 }
0x124c   :  { %v3592_v61 = vmul.f32 %v4673_v60, %v3576_v30  ;;  %v5419_v62 = vadd.f32 %v4094_v59, %v3599_v52 }
0x124e   :  { %v3600_v63 = vmul.f32 %v4093_v58, %v3592_v61  ;;  %4526 = vmatprep.mubr.msk.f32.mxu1 %vm64_vm0, %v5419_v62 }
0x1250   :  { %v5423_v0 = vadd.f32 %v4094_v59, %v3600_v63 }
0x1252   :  { %4527 = vmatmul.mubr.msk.f32.vlgmr.msra.gmra.mxu1 %vm64_vm0, %v5423_v0 }
0x1253   :  { %4572 = vmatprep.mubr.msk.f32.mxu1 %vm4711_vm1, %v4710_v34 }
0x1312   :  { %v4528_v39 = vpop.f32.mrf.mxu1 }
0x1313   :  { %v3700_v17 = vadd.f32 %v4528_v39, %v4100_v16 }
0x1314   :  { %v3694_v43 = vpop.f32.mrf.mxu1 }
0x1315   :  { %v3706_v18 = vmul.f32 0.70710677, %v3700_v17  ;;  %v3695_v57 = vadd.f32 %v4100_v16, %v3694_v43  ;;  %v3704_v8 = vmul.f32 0.5, %v3700_v17 }
0x1317   :  { %v3708_v55 = vand.u32 2147483647, %v3706_v18  ;;  %v3705_v19 = vmul.f32 0.70710677, %v3695_v57  ;;  %vm3748_vm7 = vcmp.ge.f32.partialorder %v3706_v18, 0.0  ;;  %v3703_v6 = vmul.f32 0.5, %v3695_v57 }
0x1319   :  { %v3710_v20 = vmul.f32 0.3275911, %v3708_v55  ;;  %v3707_v21 = vand.u32 2147483647, %v3705_v19  ;;  %v3736_v53 = vsub.f32 0.0, %v3708_v55  ;;  %vm3747_vm8 = vcmp.ge.f32.partialorder %v3705_v19, 0.0 }
0x131b   :  { %v3712_v22 = vadd.f32 1.0, %v3710_v20  ;;  %v3709_v46 = vmul.f32 0.3275911, %v3707_v21  ;;  %v3735_v24 = vsub.f32 0.0, %v3707_v21  ;;  %v3738_v51 = vmul.f32 %v3736_v53, %v3708_v55  ;;  %v3911_v53 = vld [vmem:[%s5533_s16 + $0x8] sm:$0xff] }
0x131d   :  { %4674 = vrcp.f32 %v3712_v22  ;;  %v3711_v23 = vadd.f32 1.0, %v3709_v46  ;;  %v3737_v26 = vmul.f32 %v3735_v24, %v3707_v21  ;;  %v3741_v28 = vmul.f32 1.442695, %v3738_v51  ;;  %v3910_v24 = vld [vmem:[%s5533_s16] sm:$0xff] }
0x131f   :  { %4676 = vrcp.f32 %v3711_v23  ;;  %v3739_v32 = vmul.f32 1.442695, %v3737_v26  ;;  %v3912_v23 = vld [vmem:[%s5533_s16 + $0x10] sm:$0xff] }
0x1320   :  { %4678 = vpow2.f32 %v3741_v28 }
0x1321   :  { %4680 = vpow2.f32 %v3739_v32  ;;  %v4123_v32 = vld [vmem:[%s5531_s14 + $0x1] ss:$0 sm:$0xff]  ;;  %s4720_s14 = smov [#allocation2]  }
0x1322   :  { %s4001_s8 = sshll.u32 %s4720_s14, 4  ;;  %s4002_s8 = int_to_ptr.vmem [resolvable:$true] %s4001_s8 }
0x1323   :  { %p4693_p1 = scmp.lt.s32.totalorder %s4002_s8, %s4002_s8 }
0x132a   :  { %v4675_v25 = vpop.eup %4674 }
0x132b   :  { %v3718_v27 = vmul.f32 1.0614054, %v4675_v25 }
0x132c   :  { %v4677_v29 = vpop.eup %4676 }
0x132d   :  { %v3720_v30 = vadd.f32 -1.4531521, %v3718_v27  ;;  %v3717_v33 = vmul.f32 1.0614054, %v4677_v29  ;;  %v4679_v56 = vpop.eup %4678 }
0x132e   :  { %v4681_v52 = vpop.eup %4680 }
0x132f   :  { %v3722_v31 = vmul.f32 %v4675_v25, %v3720_v30  ;;  %v3719_v35 = vadd.f32 -1.4531521, %v3717_v33 }
0x1331   :  { %v3724_v37 = vadd.f32 1.4214138, %v3722_v31  ;;  %v3721_v36 = vmul.f32 %v4677_v29, %v3719_v35 }
0x1333   :  { %v3726_v40 = vmul.f32 %v4675_v25, %v3724_v37  ;;  %v3723_v41 = vadd.f32 1.4214138, %v3721_v36 }
0x1335   :  { %v3728_v45 = vadd.f32 -0.28449672, %v3726_v40  ;;  %v3725_v49 = vmul.f32 %v4677_v29, %v3723_v41 }
0x1337   :  { %v3730_v38 = vmul.f32 %v4675_v25, %v3728_v45  ;;  %v3727_v48 = vadd.f32 -0.28449672, %v3725_v49 }
0x1339   :  { %v3732_v42 = vadd.f32 0.2548296, %v3730_v38  ;;  %v3729_v54 = vmul.f32 %v4677_v29, %v3727_v48  ;;  %v4125_v38 = vld [vmem:[%s5534_s17] ss:$0 sm:$0xff] }
0x133b   :  { %v3734_v47 = vmul.f32 %v4675_v25, %v3732_v42  ;;  %v3731_v58 = vadd.f32 0.2548296, %v3729_v54 }
0x133d   :  { %v3744_v50 = vmul.f32 %v4679_v56, %v3734_v47  ;;  %v3733_v59 = vmul.f32 %v4677_v29, %v3731_v58 }
0x133f   :  { %v3746_v60 = vsub.f32 1.0, %v3744_v50  ;;  %v3743_v61 = vmul.f32 %v4681_v52, %v3733_v59 }
0x1341   :  { %v3750_v63 = vsub.f32 0.0, %v3746_v60  ;;  %v3745_v1 = vsub.f32 1.0, %v3743_v61 }
0x1343   :  { %v3752_v2 = vsel %vm3748_vm7, %v3746_v60, %v3750_v63  ;;  %v3749_v3 = vsub.f32 0.0, %v3745_v1 }
0x1344   :  { %v3754_v4 = vadd.f32 1.0, %v3752_v2 }
0x1345   :  { %v3751_v5 = vsel %vm3747_vm8, %v3745_v1, %v3749_v3 }
0x1346   :  { %v3753_v7 = vadd.f32 1.0, %v3751_v5  ;;  %v3756_v10 = vmul.f32 %v3754_v4, %v3704_v8 }
0x1348   :  { %v3755_v9 = vmul.f32 %v3753_v7, %v3703_v6 }
0x134a   :  { %4561 = vmatprep.mubr.f32.mxu0 %v3755_v9 }
0x134b   :  { %4562 = vmatmul.mubr.f32.vlgmr.msra.gmra.mxu0 %v3756_v10 }
0x140b   :  { %v4563_v11 = vpop.f32.mrf.mxu0 }
0x140c   :  { %v3854_v12 = vadd.f32 %v4563_v11, %v4120_v44 }
0x140d   :  { %v3848_v13 = vpop.f32.mrf.mxu0 }
0x140e   :  { %v3858_v14 = vadd.f32 %v3854_v12, %v5423_v0  ;;  %v3849_v15 = vadd.f32 %v4120_v44, %v3848_v13 }
0x1410   :  { %v3857_v16 = vadd.f32 %v3849_v15, %v5419_v62  ;;  %v3866_v39 = vsel %vm64_vm0, %v3858_v14, 0.0  ;;  %v3913_v62 = vld [vmem:[%s5533_s16 + $0x18] sm:$0xff] }
0x1411   :  { %3867 = vadd.xlane.f32.xlu0 %v3866_v39  ;;  %4565 = vmatpush3.msra.mxu1 %v3913_v62 }
0x1412   :  { %v3863_v17 = vsel %vm64_vm0, %v3857_v16, 0.0  ;;  %4566 = vmatprep.subr.mxu1 %v4710_v34 }
0x1413   :  { %3864 = vadd.xlane.f32.xlu1 %v3863_v17  ;;  %4567 = vmatpush3.msra.mxu1 %v3912_v23 }
0x1414   :  { %4568 = vmatprep.subr.mxu1 %v4710_v34 }
0x1415   :  { %4569 = vmatpush3.msra.mxu1 %v3911_v53 }
0x1416   :  { %4570 = vmatprep.subr.mxu1 %v4710_v34  ;;  %v4124_v34 = vld [vmem:[%s5532_s15 + $0x1] ss:$0 sm:$0xff]  ;;  %s4688_s15 = scalar_lea.vmem %s4002_s8, 32 }
0x1417   :  { %4571 = vmatpush3.msra.mxu1 %v3910_v24  ;;  %p4689_p0 = scmp.ne.s32.totalorder %s4002_s8, %s4688_s15  ;;  %p4694_p2 = scmp.lt.s32.totalorder %s4688_s15, %s4688_s15 }
0x1419   :  { %p4695_p3 = por %p4694_p2, %p4693_p1 }
0x141b   :  { %p4696_p4 = pnand %p4695_p3, %p4689_p0 }
0x149a   :  { %v3868_v43 = vpop.xlane.xlu0 %3867 }
0x149b   :  { %v3870_v18 = vmul.f32 0.03125, %v3868_v43 }
0x149c   :  { %v3865_v57 = vpop.xlane.xlu1 %3864 }
0x149d   :  { %v3872_v55 = vsub.f32 %v3858_v14, %v3870_v18  ;;  %v3869_v19 = vmul.f32 0.03125, %v3865_v57 }
0x149f   :  { %v3871_v20 = vsub.f32 %v3857_v16, %v3869_v19  ;;  %v3874_v21 = vmul.f32 %v3872_v55, %v3872_v55 }
0x14a1   :  { %v3878_v22 = vsel %vm64_vm0, %v3874_v21, 0.0  ;;  %v3873_v46 = vmul.f32 %v3871_v20, %v3871_v20 }
0x14a2   :  { %3879 = vadd.xlane.f32.xlu0 %v3878_v22 }
0x14a3   :  { %v3875_v0 = vsel %vm64_vm0, %v3873_v46, 0.0 }
0x14a4   :  { %3876 = vadd.xlane.f32.xlu1 %v3875_v0 }
0x152b   :  { %v3880_v51 = vpop.xlane.xlu0 %3879 }
0x152c   :  { %v3882_v25 = vmul.f32 0.03125, %v3880_v51 }
0x152d   :  { %v3877_v26 = vpop.xlane.xlu1 %3876 }
0x152e   :  { %v3884_v27 = vadd.f32 1e-12, %v3882_v25  ;;  %v3881_v28 = vmul.f32 0.03125, %v3877_v26 }
0x1530   :  { %4682 = vrsqrt.f32 %v3884_v27  ;;  %v3883_v29 = vadd.f32 1e-12, %v3881_v28 }
0x1532   :  { %4684 = vrsqrt.f32 %v3883_v29 }
0x153d   :  { %v4683_v30 = vpop.eup %4682 }
0x153e   :  { %v3888_v33 = vmul.f32 %v4683_v30, %v3872_v55 }
0x153f   :  { %v4685_v31 = vpop.eup %4684 }
0x1540   :  { %v3887_v35 = vmul.f32 %v4685_v31, %v3871_v20  ;;  %v3896_v37 = vmul.f32 %v4123_v32, %v3888_v33 }
0x1542   :  { %v3895_v36 = vmul.f32 %v4123_v32, %v3887_v35  ;;  %v3904_v40 = vadd.f32 %v4124_v34, %v3896_v37 }
0x1544   :  { %v3903_v41 = vadd.f32 %v4124_v34, %v3895_v36  ;;  %v3906_v45 = vrot.slane %v3904_v40, 7 }
0x1546   :  { %v3909_v49 = vsel %vm3908_vm9, %v3903_v41, %v3906_v45 }
0x1547   :  { %4573 = vmatmul.mubr.msk.f32.vlgmr.msra.gmra.mxu1 %vm64_vm0, %v3909_v49 }
0x1607   :  { %v3990_v48 = vpop.f32.mrf.mxu1 }
0x1608   :  { %v3991_v42 = vadd.f32 %v4125_v38, %v3990_v48 }
0x1609   :  { %v4574_v54 = vpop.f32.mrf.mxu1 }
0x160a   :  { %3994 = vst [vmem:[#allocation2] sm:$0x3] %v3991_v42 }
0x160b   :  { %4699 = shalt.err (!%p4696_p4)
}
0x160c   :  { %4004 = dma.vmem_to_hbm [thread:$0]  %s4002_s8, 32, %s5535_s18, [#allocation3]  }
0x160d   :  { %4708 = dma.done.wait [#allocation3], 32  }
0x160e   :  { %4709 = vsyncadd [#allocation3], 4294967264 }
0x160f   :  { %4008 = vsyncpa [#allocation3], 1 }

</bundles_post_ra>
